<compile_context>
chip_gen: v7x
topology: tpu7x:2x2x1
jax: 0.10.0
libtpu: 0.0.40
codegen_flags: <defaults>
</compile_context>

<pallas_src>
import functools

import jax
import jax.numpy as jnp
from jax.experimental import pallas as pl
from jax.experimental.pallas import tpu as pltpu


def _round_up(x, m):
    return (x + m - 1) // m * m


# PyTorch nn.LSTM gate order is (i, f, g, o); the kernel uses (i, f, o, g).
_GATE_PERM = (0, 1, 3, 2)


# ----------------------------------------------------------------------------
# Pallas kernel: one LSTM layer (fused input projection + serial recurrence).
# ----------------------------------------------------------------------------
def _lstm_layer_kernel(x_ref, wih_ref, whh_ref, bias_ref, h0_ref, c0_ref,
                       y_ref, hT_ref, cT_ref, h_sc, c_sc,
                       *, t_chunk, batch_p, hidden_p, last_chunk, last_tt):
    chunk = pl.program_id(0)
    Hp, Bp = hidden_p, batch_p

    @pl.when(chunk == 0)
    def _():
        h_sc[...] = h0_ref[...].astype(jnp.bfloat16)
        c_sc[...] = c0_ref[...]

    # Fused input projection for the whole chunk: one MXU matmul over all
    # t_chunk timesteps (bf16 operands, f32 accumulation), bias folded in.
    gates_in = jnp.dot(x_ref[...], wih_ref[...],
                       preferred_element_type=jnp.float32) + bias_ref[...]

    whh = whh_ref[...]                      # hoisted VMEM read (loop-invariant)

    # Register-carried recurrence: read scratch once, write back once.
    h = h_sc[...]                           # bf16 — recurrent matmul operand
    c = c_sc[...]                           # f32  — cell state
    for tt in range(t_chunk):               # fully unrolled, static indices
        gates = gates_in[tt * Bp:(tt + 1) * Bp, :] + jnp.dot(
            h, whh, preferred_element_type=jnp.float32)      # (Bp, 4*Hp) f32

        # Gate order (i, f, o, g): one sigmoid slab + one tanh slab.
        ifo = jax.nn.sigmoid(gates[:, :3 * Hp])
        g_g = jnp.tanh(gates[:, 3 * Hp:])
        c = ifo[:, Hp:2 * Hp] * c + ifo[:, :Hp] * g_g         # f*c + i*g
        h_f32 = ifo[:, 2 * Hp:] * jnp.tanh(c)                  # o * tanh(c)
        h = h_f32.astype(jnp.bfloat16)

        y_ref[tt * Bp:(tt + 1) * Bp, :] = h                    # bf16 output

        if tt == last_tt:
            # Capture (h_T, c_T) at the last REAL timestep so zero-padded
            # tail timesteps never affect the returned state.
            @pl.when(chunk == last_chunk)
            def _(h_f32=h_f32, c=c):
                hT_ref[...] = h_f32
                cT_ref[...] = c

    h_sc[...] = h
    c_sc[...] = c


def _vmem_limit_bytes(t_chunk, batch_p, d_in_p, hidden_p):
    bf16, f32 = 2, 4
    est = (
        2 * t_chunk * batch_p * d_in_p * bf16        # x chunk, double-buffered
        + 2 * t_chunk * batch_p * hidden_p * bf16    # y chunk, double-buffered
        + d_in_p * 4 * hidden_p * bf16               # W_ih^T, single-buffered
        + hidden_p * 4 * hidden_p * bf16             # W_hh^T, single-buffered
        + 8 * 4 * hidden_p * f32                     # bias (sublane padded)
        + 4 * batch_p * hidden_p * f32               # h0, c0, hT, cT
        + batch_p * hidden_p * (bf16 + f32)          # h/c scratch
        + t_chunk * batch_p * 4 * hidden_p * f32     # live gates_in value
    )
    # Clamp to 64 MiB so the limit is valid on v7x (64 MiB VMEM) as well as
    # v5e/v6e (128 MiB); 32 MiB floor keeps compiler internal scratch happy.
    return int(min(max(2 * est, 32 << 20), 64 << 20))


def lstm_layer_pallas(x2, w_ih_t, w_hh_t, bias, h0, c0, *, seq_real, t_chunk):
    """One LSTM layer.

    x2      : (seq_p*B_p, d_in_p) bf16   time-major flattened padded input
    w_ih_t  : (d_in_p, 4*H_p)     bf16   transposed, gate-reordered, padded
    w_hh_t  : (H_p, 4*H_p)        bf16
    bias    : (1, 4*H_p)          f32    (b_ih + b_hh), gate-reordered, padded
    h0, c0  : (B_p, H_p)          f32
    returns : y2 (seq_p*B_p, H_p) bf16,  hT (B_p, H_p) f32,  cT (B_p, H_p) f32
    """
    batch_p, hidden_p = h0.shape
    d_in_p = x2.shape[1]
    g4 = 4 * hidden_p
    seq_p = x2.shape[0] // batch_p
    assert seq_p % t_chunk == 0
    n_chunks = seq_p // t_chunk
    last_chunk = (seq_real - 1) // t_chunk
    last_tt = (seq_real - 1) % t_chunk
    rows = t_chunk * batch_p

    kernel = functools.partial(
        _lstm_layer_kernel, t_chunk=t_chunk, batch_p=batch_p,
        hidden_p=hidden_p, last_chunk=last_chunk, last_tt=last_tt)

    single = pl.Buffered(1)   # grid-invariant operands: no double-buffering
    grid_spec = pltpu.PrefetchScalarGridSpec(
        num_scalar_prefetch=0,
        grid=(n_chunks,),
        in_specs=[
            pl.BlockSpec((rows, d_in_p), lambda t: (t, 0)),                 # x chunk
            pl.BlockSpec((d_in_p, g4), lambda t: (0, 0), pipeline_mode=single),   # W_ih^T
            pl.BlockSpec((hidden_p, g4), lambda t: (0, 0), pipeline_mode=single),  # W_hh^T
            pl.BlockSpec((1, g4), lambda t: (0, 0), pipeline_mode=single),         # bias
            pl.BlockSpec((batch_p, hidden_p), lambda t: (0, 0), pipeline_mode=single),  # h0
            pl.BlockSpec((batch_p, hidden_p), lambda t: (0, 0), pipeline_mode=single),  # c0
        ],
        out_specs=[
            pl.BlockSpec((rows, hidden_p), lambda t: (t, 0)),               # y chunk
            pl.BlockSpec((batch_p, hidden_p), lambda t: (0, 0)),            # h_T
            pl.BlockSpec((batch_p, hidden_p), lambda t: (0, 0)),            # c_T
        ],
        scratch_shapes=[
            pltpu.VMEM((batch_p, hidden_p), jnp.bfloat16),   # h carry
            pltpu.VMEM((batch_p, hidden_p), jnp.float32),    # c carry
        ],
    )

    y2, hT, cT = pl.pallas_call(
        kernel,
        out_shape=(
            jax.ShapeDtypeStruct((seq_p * batch_p, hidden_p), jnp.bfloat16),
            jax.ShapeDtypeStruct((batch_p, hidden_p), jnp.float32),
            jax.ShapeDtypeStruct((batch_p, hidden_p), jnp.float32),
        ),
        grid_spec=grid_spec,
        compiler_params=pltpu.CompilerParams(
            dimension_semantics=("arbitrary",),   # time carries h/c state
            vmem_limit_bytes=_vmem_limit_bytes(t_chunk, batch_p, d_in_p, hidden_p)),
    )(x2, w_ih_t, w_hh_t, bias, h0, c0)
    return y2, hT, cT


# ----------------------------------------------------------------------------
# Parameter construction / preparation.
# ----------------------------------------------------------------------------
def make_params(key, vocab, dim_input, dim_lstm, nb_layers):
    """Logical (PyTorch-equivalent) f32 parameters (gate order i, f, g, o)."""
    keys = jax.random.split(key, 1 + 4 * nb_layers)
    embedding = jax.random.uniform(keys[0], (vocab, dim_input),
                                   jnp.float32, -0.1, 0.1)
    params = {"embedding": embedding, "lstm": []}
    std = 1.0 / jnp.sqrt(jnp.float32(dim_lstm))
    for l in range(nb_layers):
        d_in = dim_input if l == 0 else dim_lstm
        k_wih, k_whh, k_bih, k_bhh = keys[1 + 4 * l: 5 + 4 * l]
        w_ih = jax.random.uniform(k_wih, (4 * dim_lstm, d_in), jnp.float32, -std, std)
        w_hh = jax.random.uniform(k_whh, (4 * dim_lstm, dim_lstm), jnp.float32, -std, std)
        b_ih = jax.random.uniform(k_bih, (4 * dim_lstm,), jnp.float32, -std, std)
        b_hh = jax.random.uniform(k_bhh, (4 * dim_lstm,), jnp.float32, -std, std)
        params["lstm"].append({
            "w_ih_t": w_ih.T,                    # (d_in, 4H)
            "w_hh_t": w_hh.T,                    # (H, 4H)
            "bias": (b_ih + b_hh)[None, :],      # (1, 4H)
        })
    return params


def _pack_gate_cols(w, hidden, hidden_p):
    """(rows, 4*H) PyTorch order (i,f,g,o) -> (rows, 4*H_p) kernel order
    (i,f,o,g), each gate block zero-padded to H_p lanes."""
    rows = w.shape[0]
    w4 = w.reshape(rows, 4, hidden)[:, _GATE_PERM, :]
    w4 = jnp.pad(w4, ((0, 0), (0, 0), (0, hidden_p - hidden)))
    return w4.reshape(rows, 4 * hidden_p)


def prepare_kernel_params(params, dim_input, dim_lstm):
    """Pad to (8,128)-friendly shapes, reorder gates, cast MXU operands to bf16."""
    Hp = _round_up(dim_lstm, 128)
    Din0 = _round_up(dim_input, 128)
    emb_p = jnp.pad(params["embedding"],
                    ((0, 0), (0, Din0 - dim_input))).astype(jnp.bfloat16)
    kp = {"embedding": emb_p, "hidden_p": Hp, "lstm": []}
    for l, lp in enumerate(params["lstm"]):
        d_in = lp["w_ih_t"].shape[0]
        d_in_p = Din0 if l == 0 else Hp          # deeper layers consume padded y
        w_ih_p = _pack_gate_cols(lp["w_ih_t"], dim_lstm, Hp)
        w_ih_p = jnp.pad(w_ih_p, ((0, d_in_p - d_in), (0, 0)))
        w_hh_p = _pack_gate_cols(lp["w_hh_t"], dim_lstm, Hp)
        w_hh_p = jnp.pad(w_hh_p, ((0, Hp - dim_lstm), (0, 0)))
        bias_p = _pack_gate_cols(lp["bias"], dim_lstm, Hp)
        kp["lstm"].append({
            "w_ih_t": w_ih_p.astype(jnp.bfloat16),    # (d_in_p, 4*H_p)
            "w_hh_t": w_hh_p.astype(jnp.bfloat16),    # (H_p, 4*H_p)
            "bias": bias_p,                           # (1, 4*H_p) f32
        })
    return kp


# ----------------------------------------------------------------------------
# LSTMLanguageModel forward (eval mode: dropout == identity).
# ----------------------------------------------------------------------------
def lstm_language_model_forward(kernel_params, token_ids, hidden, *, t_chunk=None):
    """
    token_ids : (batch, seq) int32
    hidden    : tuple (h0, c0), each (nlayers, batch, dim_lstm)
    returns   : (output (batch, seq, dim_lstm) f32, (h_n, c_n))
    """
    h0_all, c0_all = hidden
    nlayers, batch, H = h0_all.shape
    seq = token_ids.shape[1]
    Hp = kernel_params["hidden_p"]
    Bp = _round_up(batch, 8)

    if t_chunk is None:
        t_chunk = min(seq, 16)
    seq_p = _round_up(seq, t_chunk)       # zero-pad tail instead of shrinking t_chunk

    # encoder: embedding gather directly in time-major layout, bf16, padded.
    # self.drop(emb): identity in eval mode.
    x = jnp.take(kernel_params["embedding"], token_ids.T, axis=0)  # (seq, batch, d_in_p) bf16
    x = jnp.pad(x, ((0, seq_p - seq), (0, Bp - batch), (0, 0)))
    d_in_p = x.shape[-1]
    x2 = x.reshape(seq_p * Bp, d_in_p)                             # flat time-major

    h0_p = jnp.pad(h0_all, ((0, 0), (0, Bp - batch), (0, Hp - H)))
    c0_p = jnp.pad(c0_all, ((0, 0), (0, Bp - batch), (0, Hp - H)))

    h_finals, c_finals = [], []
    y2 = x2
    for l, lp in enumerate(kernel_params["lstm"]):
        y2, hT, cT = lstm_layer_pallas(
            y2, lp["w_ih_t"], lp["w_hh_t"], lp["bias"], h0_p[l], c0_p[l],
            seq_real=seq, t_chunk=t_chunk)
        # inter-layer dropout: identity in eval mode
        h_finals.append(hT[:batch, :H])
        c_finals.append(cT[:batch, :H])

    y = y2.reshape(seq_p, Bp, Hp)[:seq, :batch, :H].astype(jnp.float32)
    output = jnp.transpose(y, (1, 0, 2))          # back to batch_first
    # self.drop(output): identity in eval mode
    return output, (jnp.stack(h_finals), jnp.stack(c_finals))


# ----------------------------------------------------------------------------
# Pure-JAX f32 reference (lax.scan LSTM) for correctness checking.
# ----------------------------------------------------------------------------
def reference_forward(params, token_ids, hidden):
    h0_all, c0_all = hidden
    emb = jnp.take(params["embedding"], token_ids, axis=0)
    x = jnp.transpose(emb, (1, 0, 2))                          # (seq, batch, d)

    def layer(x_tm, lp, h0, c0):
        H = h0.shape[-1]

        def step(carry, x_t):
            h, c = carry
            gates = x_t @ lp["w_ih_t"] + h @ lp["w_hh_t"] + lp["bias"]
            i = jax.nn.sigmoid(gates[:, 0 * H:1 * H])
            f = jax.nn.sigmoid(gates[:, 1 * H:2 * H])
            g = jnp.tanh(gates[:, 2 * H:3 * H])
            o = jax.nn.sigmoid(gates[:, 3 * H:4 * H])
            c_new = f * c + i * g
            h_new = o * jnp.tanh(c_new)
            return (h_new, c_new), h_new

        (hT, cT), ys = jax.lax.scan(step, (h0, c0), x_tm)
        return ys, hT, cT

    hs, cs = [], []
    for l, lp in enumerate(params["lstm"]):
        x, hT, cT = layer(x, lp, h0_all[l], c0_all[l])
        hs.append(hT)
        cs.append(cT)
    return jnp.transpose(x, (1, 0, 2)), (jnp.stack(hs), jnp.stack(cs))


if __name__ == "__main__":
    vocab = 50
    dim_input = 32
    dim_lstm = 32
    nb_layers = 2
    batch = 2
    seq = 8

    key = jax.random.PRNGKey(0)
    k_params, k_tok = jax.random.split(key)
    params = make_params(k_params, vocab, dim_input, dim_lstm, nb_layers)
    kparams = prepare_kernel_params(params, dim_input, dim_lstm)

    token_ids = jax.random.randint(k_tok, (batch, seq), 0, vocab, dtype=jnp.int32)
    # init_hidden(bsz): zeros of shape (nlayers, batch, dim_lstm)
    h0 = jnp.zeros((nb_layers, batch, dim_lstm), jnp.float32)
    c0 = jnp.zeros((nb_layers, batch, dim_lstm), jnp.float32)

    # t_chunk=4 -> 2 grid steps per layer, exercising the cross-chunk h/c carry.
    output, (h_n, c_n) = lstm_language_model_forward(
        kparams, token_ids, (h0, c0), t_chunk=4)
    jax.block_until_ready((output, h_n, c_n))

    ref_out, (ref_h, ref_c) = reference_forward(params, token_ids, (h0, c0))
    assert output.shape == (batch, seq, dim_lstm)
    assert h_n.shape == (nb_layers, batch, dim_lstm)
    assert c_n.shape == (nb_layers, batch, dim_lstm)
    # bf16 MXU operands / bf16 h carry (f32 accumulation & cell state)
    # -> loosened tolerance vs the f32 reference.
    assert jnp.allclose(output, ref_out, atol=2e-2, rtol=2e-2)
    assert jnp.allclose(h_n, ref_h, atol=2e-2, rtol=2e-2)
    assert jnp.allclose(c_n, ref_c, atol=2e-2, rtol=2e-2)

    print("KERNEL_OK")
</pallas_src>

<mosaic_0001>
module attributes {stable_mosaic.version = 11 : i64} {
  func.func @_lstm_layer_kernel(%arg0: i32, %arg1: memref<32x128xbf16, #tpu.memory_space<vmem>>, %arg2: memref<128x512xbf16, #tpu.memory_space<vmem>>, %arg3: memref<128x512xbf16, #tpu.memory_space<vmem>>, %arg4: memref<1x512xf32, #tpu.memory_space<vmem>>, %arg5: memref<8x128xf32, #tpu.memory_space<vmem>>, %arg6: memref<8x128xf32, #tpu.memory_space<vmem>>, %arg7: memref<32x128xbf16, #tpu.memory_space<vmem>>, %arg8: memref<8x128xf32, #tpu.memory_space<vmem>>, %arg9: memref<8x128xf32, #tpu.memory_space<vmem>>, %arg10: memref<8x128xbf16, #tpu.memory_space<vmem>>, %arg11: memref<8x128xf32, #tpu.memory_space<vmem>>) attributes {dimension_semantics = [#tpu.dimension_semantics<arbitrary>], iteration_bounds = array<i64: 2>, scalar_prefetch = 0 : i64, scratch_operands = 2 : i64, tpu.core_type = #tpu.core_type<tc>, window_params = [{transform_indices = @transform_0, window_bounds = array<i64: 32, 128>}, {pipeline_mode = #tpu.pipeline_mode<synchronous>, transform_indices = @transform_1, window_bounds = array<i64: 128, 512>}, {pipeline_mode = #tpu.pipeline_mode<synchronous>, transform_indices = @transform_2, window_bounds = array<i64: 128, 512>}, {pipeline_mode = #tpu.pipeline_mode<synchronous>, transform_indices = @transform_3, window_bounds = array<i64: 1, 512>}, {pipeline_mode = #tpu.pipeline_mode<synchronous>, transform_indices = @transform_4, window_bounds = array<i64: 8, 128>}, {pipeline_mode = #tpu.pipeline_mode<synchronous>, transform_indices = @transform_5, window_bounds = array<i64: 8, 128>}, {transform_indices = @transform_6, window_bounds = array<i64: 32, 128>}, {pipeline_mode = #tpu.pipeline_mode<synchronous>, transform_indices = @transform_7, window_bounds = array<i64: 8, 128>}, {pipeline_mode = #tpu.pipeline_mode<synchronous>, transform_indices = @transform_8, window_bounds = array<i64: 8, 128>}]} {
    %c0_i32 = arith.constant 0 : i32
    %0 = arith.cmpi eq, %arg0, %c0_i32 : i32
    %1 = arith.extui %0 : i1 to i32
    %c0_i32_0 = arith.constant 0 : i32
    %2 = arith.cmpi ne, %1, %c0_i32_0 : i32
    scf.if %2 {
      %c0_30 = arith.constant 0 : index
      %c0_31 = arith.constant 0 : index
      %101 = vector.load %arg5[%c0_30, %c0_31] : memref<8x128xf32, #tpu.memory_space<vmem>>, vector<8x128xf32>
      %102 = arith.truncf %101 : vector<8x128xf32> to vector<8x128xbf16>
      %c0_32 = arith.constant 0 : index
      %c0_33 = arith.constant 0 : index
      %103 = vector.load %arg10[%c0_32, %c0_33] : memref<8x128xbf16, #tpu.memory_space<vmem>>, vector<8x128xbf16>
      tpu.vector_store %arg10[%c0_32, %c0_33], %102 {strides = array<i32>} : memref<8x128xbf16, #tpu.memory_space<vmem>>, vector<8x128xbf16>,
      %c0_34 = arith.constant 0 : index
      %c0_35 = arith.constant 0 : index
      %104 = vector.load %arg6[%c0_34, %c0_35] : memref<8x128xf32, #tpu.memory_space<vmem>>, vector<8x128xf32>
      %c0_36 = arith.constant 0 : index
      %c0_37 = arith.constant 0 : index
      %105 = vector.load %arg11[%c0_36, %c0_37] : memref<8x128xf32, #tpu.memory_space<vmem>>, vector<8x128xf32>
      tpu.vector_store %arg11[%c0_36, %c0_37], %104 {strides = array<i32>} : memref<8x128xf32, #tpu.memory_space<vmem>>, vector<8x128xf32>,
    } else {
    }
    %c0 = arith.constant 0 : index
    %c0_1 = arith.constant 0 : index
    %3 = vector.load %arg1[%c0, %c0_1] : memref<32x128xbf16, #tpu.memory_space<vmem>>, vector<32x128xbf16>
    %c0_2 = arith.constant 0 : index
    %c0_3 = arith.constant 0 : index
    %4 = vector.load %arg2[%c0_2, %c0_3] : memref<128x512xbf16, #tpu.memory_space<vmem>>, vector<128x512xbf16>
    %cst = arith.constant dense<0.000000e+00> : vector<32x512xf32>
    %5 = tpu.matmul %3, %4, %cst {dimension_numbers = #tpu.dot_dimension_numbers<[1], [0], [0], [1], [0, 0, 1, 1], [], []>} : vector<32x128xbf16>, vector<128x512xbf16>, vector<32x512xf32> -> vector<32x512xf32>
    %c0_4 = arith.constant 0 : index
    %c0_5 = arith.constant 0 : index
    %6 = vector.load %arg4[%c0_4, %c0_5] : memref<1x512xf32, #tpu.memory_space<vmem>>, vector<1x512xf32>
    %7 = vector.broadcast %6 : vector<1x512xf32> to vector<32x512xf32>
    %8 = arith.addf %5, %7 : vector<32x512xf32>
    %c0_6 = arith.constant 0 : index
    %c0_7 = arith.constant 0 : index
    %9 = vector.load %arg3[%c0_6, %c0_7] : memref<128x512xbf16, #tpu.memory_space<vmem>>, vector<128x512xbf16>
    %c0_8 = arith.constant 0 : index
    %c0_9 = arith.constant 0 : index
    %10 = vector.load %arg10[%c0_8, %c0_9] : memref<8x128xbf16, #tpu.memory_space<vmem>>, vector<8x128xbf16>
    %c0_10 = arith.constant 0 : index
    %c0_11 = arith.constant 0 : index
    %11 = vector.load %arg11[%c0_10, %c0_11] : memref<8x128xf32, #tpu.memory_space<vmem>>, vector<8x128xf32>
    %12 = vector.extract_strided_slice %8 {offsets = [0, 0], sizes = [8, 512], strides = [1, 1]} : vector<32x512xf32> to vector<8x512xf32>
    %cst_12 = arith.constant dense<0.000000e+00> : vector<8x512xf32>
    %13 = tpu.matmul %10, %9, %cst_12 {dimension_numbers = #tpu.dot_dimension_numbers<[1], [0], [0], [1], [0, 0, 1, 1], [], []>} : vector<8x128xbf16>, vector<128x512xbf16>, vector<8x512xf32> -> vector<8x512xf32>
    %14 = arith.addf %12, %13 : vector<8x512xf32>
    %15 = vector.extract_strided_slice %14 {offsets = [0, 0], sizes = [8, 384], strides = [1, 1]} : vector<8x512xf32> to vector<8x384xf32>
    %16 = arith.negf %15 : vector<8x384xf32>
    %17 = math.exp %16 : vector<8x384xf32>
    %cst_13 = arith.constant 1.000000e+00 : f32
    %18 = vector.broadcast %cst_13 : f32 to vector<8x384xf32>
    %19 = arith.addf %18, %17 : vector<8x384xf32>
    %20 = arith.divf %18, %19 : vector<8x384xf32>
    %21 = vector.extract_strided_slice %14 {offsets = [0, 384], sizes = [8, 128], strides = [1, 1]} : vector<8x512xf32> to vector<8x128xf32>
    %22 = math.tanh %21 : vector<8x128xf32>
    %23 = vector.extract_strided_slice %20 {offsets = [0, 128], sizes = [8, 128], strides = [1, 1]} : vector<8x384xf32> to vector<8x128xf32>
    %24 = arith.mulf %23, %11 : vector<8x128xf32>
    %25 = vector.extract_strided_slice %20 {offsets = [0, 0], sizes = [8, 128], strides = [1, 1]} : vector<8x384xf32> to vector<8x128xf32>
    %26 = arith.mulf %25, %22 : vector<8x128xf32>
    %27 = arith.addf %24, %26 : vector<8x128xf32>
    %28 = vector.extract_strided_slice %20 {offsets = [0, 256], sizes = [8, 128], strides = [1, 1]} : vector<8x384xf32> to vector<8x128xf32>
    %29 = math.tanh %27 : vector<8x128xf32>
    %30 = arith.mulf %28, %29 : vector<8x128xf32>
    %31 = arith.truncf %30 : vector<8x128xf32> to vector<8x128xbf16>
    %c0_14 = arith.constant 0 : index
    %c0_15 = arith.constant 0 : index
    %32 = vector.load %arg7[%c0_14, %c0_15] : memref<32x128xbf16, #tpu.memory_space<vmem>>, vector<8x128xbf16>
    tpu.vector_store %arg7[%c0_14, %c0_15], %31 {strides = array<i32>} : memref<32x128xbf16, #tpu.memory_space<vmem>>, vector<8x128xbf16>,
    %33 = vector.extract_strided_slice %8 {offsets = [8, 0], sizes = [8, 512], strides = [1, 1]} : vector<32x512xf32> to vector<8x512xf32>
    %cst_16 = arith.constant dense<0.000000e+00> : vector<8x512xf32>
    %34 = tpu.matmul %31, %9, %cst_16 {dimension_numbers = #tpu.dot_dimension_numbers<[1], [0], [0], [1], [0, 0, 1, 1], [], []>} : vector<8x128xbf16>, vector<128x512xbf16>, vector<8x512xf32> -> vector<8x512xf32>
    %35 = arith.addf %33, %34 : vector<8x512xf32>
    %36 = vector.extract_strided_slice %35 {offsets = [0, 0], sizes = [8, 384], strides = [1, 1]} : vector<8x512xf32> to vector<8x384xf32>
    %37 = arith.negf %36 : vector<8x384xf32>
    %38 = math.exp %37 : vector<8x384xf32>
    %cst_17 = arith.constant 1.000000e+00 : f32
    %39 = vector.broadcast %cst_17 : f32 to vector<8x384xf32>
    %40 = arith.addf %39, %38 : vector<8x384xf32>
    %41 = arith.divf %39, %40 : vector<8x384xf32>
    %42 = vector.extract_strided_slice %35 {offsets = [0, 384], sizes = [8, 128], strides = [1, 1]} : vector<8x512xf32> to vector<8x128xf32>
    %43 = math.tanh %42 : vector<8x128xf32>
    %44 = vector.extract_strided_slice %41 {offsets = [0, 128], sizes = [8, 128], strides = [1, 1]} : vector<8x384xf32> to vector<8x128xf32>
    %45 = arith.mulf %44, %27 : vector<8x128xf32>
    %46 = vector.extract_strided_slice %41 {offsets = [0, 0], sizes = [8, 128], strides = [1, 1]} : vector<8x384xf32> to vector<8x128xf32>
    %47 = arith.mulf %46, %43 : vector<8x128xf32>
    %48 = arith.addf %45, %47 : vector<8x128xf32>
    %49 = vector.extract_strided_slice %41 {offsets = [0, 256], sizes = [8, 128], strides = [1, 1]} : vector<8x384xf32> to vector<8x128xf32>
    %50 = math.tanh %48 : vector<8x128xf32>
    %51 = arith.mulf %49, %50 : vector<8x128xf32>
    %52 = arith.truncf %51 : vector<8x128xf32> to vector<8x128xbf16>
    %c8 = arith.constant 8 : index
    %c0_18 = arith.constant 0 : index
    %53 = vector.load %arg7[%c8, %c0_18] : memref<32x128xbf16, #tpu.memory_space<vmem>>, vector<8x128xbf16>
    tpu.vector_store %arg7[%c8, %c0_18], %52 {strides = array<i32>} : memref<32x128xbf16, #tpu.memory_space<vmem>>, vector<8x128xbf16>,
    %54 = vector.extract_strided_slice %8 {offsets = [16, 0], sizes = [8, 512], strides = [1, 1]} : vector<32x512xf32> to vector<8x512xf32>
    %cst_19 = arith.constant dense<0.000000e+00> : vector<8x512xf32>
    %55 = tpu.matmul %52, %9, %cst_19 {dimension_numbers = #tpu.dot_dimension_numbers<[1], [0], [0], [1], [0, 0, 1, 1], [], []>} : vector<8x128xbf16>, vector<128x512xbf16>, vector<8x512xf32> -> vector<8x512xf32>
    %56 = arith.addf %54, %55 : vector<8x512xf32>
    %57 = vector.extract_strided_slice %56 {offsets = [0, 0], sizes = [8, 384], strides = [1, 1]} : vector<8x512xf32> to vector<8x384xf32>
    %58 = arith.negf %57 : vector<8x384xf32>
    %59 = math.exp %58 : vector<8x384xf32>
    %cst_20 = arith.constant 1.000000e+00 : f32
    %60 = vector.broadcast %cst_20 : f32 to vector<8x384xf32>
    %61 = arith.addf %60, %59 : vector<8x384xf32>
    %62 = arith.divf %60, %61 : vector<8x384xf32>
    %63 = vector.extract_strided_slice %56 {offsets = [0, 384], sizes = [8, 128], strides = [1, 1]} : vector<8x512xf32> to vector<8x128xf32>
    %64 = math.tanh %63 : vector<8x128xf32>
    %65 = vector.extract_strided_slice %62 {offsets = [0, 128], sizes = [8, 128], strides = [1, 1]} : vector<8x384xf32> to vector<8x128xf32>
    %66 = arith.mulf %65, %48 : vector<8x128xf32>
    %67 = vector.extract_strided_slice %62 {offsets = [0, 0], sizes = [8, 128], strides = [1, 1]} : vector<8x384xf32> to vector<8x128xf32>
    %68 = arith.mulf %67, %64 : vector<8x128xf32>
    %69 = arith.addf %66, %68 : vector<8x128xf32>
    %70 = vector.extract_strided_slice %62 {offsets = [0, 256], sizes = [8, 128], strides = [1, 1]} : vector<8x384xf32> to vector<8x128xf32>
    %71 = math.tanh %69 : vector<8x128xf32>
    %72 = arith.mulf %70, %71 : vector<8x128xf32>
    %73 = arith.truncf %72 : vector<8x128xf32> to vector<8x128xbf16>
    %c16 = arith.constant 16 : index
    %c0_21 = arith.constant 0 : index
    %74 = vector.load %arg7[%c16, %c0_21] : memref<32x128xbf16, #tpu.memory_space<vmem>>, vector<8x128xbf16>
    tpu.vector_store %arg7[%c16, %c0_21], %73 {strides = array<i32>} : memref<32x128xbf16, #tpu.memory_space<vmem>>, vector<8x128xbf16>,
    %75 = vector.extract_strided_slice %8 {offsets = [24, 0], sizes = [8, 512], strides = [1, 1]} : vector<32x512xf32> to vector<8x512xf32>
    %cst_22 = arith.constant dense<0.000000e+00> : vector<8x512xf32>
    %76 = tpu.matmul %73, %9, %cst_22 {dimension_numbers = #tpu.dot_dimension_numbers<[1], [0], [0], [1], [0, 0, 1, 1], [], []>} : vector<8x128xbf16>, vector<128x512xbf16>, vector<8x512xf32> -> vector<8x512xf32>
    %77 = arith.addf %75, %76 : vector<8x512xf32>
    %78 = vector.extract_strided_slice %77 {offsets = [0, 0], sizes = [8, 384], strides = [1, 1]} : vector<8x512xf32> to vector<8x384xf32>
    %79 = arith.negf %78 : vector<8x384xf32>
    %80 = math.exp %79 : vector<8x384xf32>
    %cst_23 = arith.constant 1.000000e+00 : f32
    %81 = vector.broadcast %cst_23 : f32 to vector<8x384xf32>
    %82 = arith.addf %81, %80 : vector<8x384xf32>
    %83 = arith.divf %81, %82 : vector<8x384xf32>
    %84 = vector.extract_strided_slice %77 {offsets = [0, 384], sizes = [8, 128], strides = [1, 1]} : vector<8x512xf32> to vector<8x128xf32>
    %85 = math.tanh %84 : vector<8x128xf32>
    %86 = vector.extract_strided_slice %83 {offsets = [0, 128], sizes = [8, 128], strides = [1, 1]} : vector<8x384xf32> to vector<8x128xf32>
    %87 = arith.mulf %86, %69 : vector<8x128xf32>
    %88 = vector.extract_strided_slice %83 {offsets = [0, 0], sizes = [8, 128], strides = [1, 1]} : vector<8x384xf32> to vector<8x128xf32>
    %89 = arith.mulf %88, %85 : vector<8x128xf32>
    %90 = arith.addf %87, %89 : vector<8x128xf32>
    %91 = vector.extract_strided_slice %83 {offsets = [0, 256], sizes = [8, 128], strides = [1, 1]} : vector<8x384xf32> to vector<8x128xf32>
    %92 = math.tanh %90 : vector<8x128xf32>
    %93 = arith.mulf %91, %92 : vector<8x128xf32>
    %94 = arith.truncf %93 : vector<8x128xf32> to vector<8x128xbf16>
    %c24 = arith.constant 24 : index
    %c0_24 = arith.constant 0 : index
    %95 = vector.load %arg7[%c24, %c0_24] : memref<32x128xbf16, #tpu.memory_space<vmem>>, vector<8x128xbf16>
    tpu.vector_store %arg7[%c24, %c0_24], %94 {strides = array<i32>} : memref<32x128xbf16, #tpu.memory_space<vmem>>, vector<8x128xbf16>,
    %c1_i32 = arith.constant 1 : i32
    %96 = arith.cmpi eq, %arg0, %c1_i32 : i32
    %97 = arith.extui %96 : i1 to i32
    %c0_i32_25 = arith.constant 0 : i32
    %98 = arith.cmpi ne, %97, %c0_i32_25 : i32
    scf.if %98 {
      %c0_30 = arith.constant 0 : index
      %c0_31 = arith.constant 0 : index
      %101 = vector.load %arg8[%c0_30, %c0_31] : memref<8x128xf32, #tpu.memory_space<vmem>>, vector<8x128xf32>
      tpu.vector_store %arg8[%c0_30, %c0_31], %93 {strides = array<i32>} : memref<8x128xf32, #tpu.memory_space<vmem>>, vector<8x128xf32>,
      %c0_32 = arith.constant 0 : index
      %c0_33 = arith.constant 0 : index
      %102 = vector.load %arg9[%c0_32, %c0_33] : memref<8x128xf32, #tpu.memory_space<vmem>>, vector<8x128xf32>
      tpu.vector_store %arg9[%c0_32, %c0_33], %90 {strides = array<i32>} : memref<8x128xf32, #tpu.memory_space<vmem>>, vector<8x128xf32>,
    } else {
    }
    %c0_26 = arith.constant 0 : index
    %c0_27 = arith.constant 0 : index
    %99 = vector.load %arg10[%c0_26, %c0_27] : memref<8x128xbf16, #tpu.memory_space<vmem>>, vector<8x128xbf16>
    tpu.vector_store %arg10[%c0_26, %c0_27], %94 {strides = array<i32>} : memref<8x128xbf16, #tpu.memory_space<vmem>>, vector<8x128xbf16>,
    %c0_28 = arith.constant 0 : index
    %c0_29 = arith.constant 0 : index
    %100 = vector.load %arg11[%c0_28, %c0_29] : memref<8x128xf32, #tpu.memory_space<vmem>>, vector<8x128xf32>
    tpu.vector_store %arg11[%c0_28, %c0_29], %90 {strides = array<i32>} : memref<8x128xf32, #tpu.memory_space<vmem>>, vector<8x128xf32>,
    return
  }
  func.func @transform_0(%arg0: i32) -> (i32, i32) {
    %c0_i32 = arith.constant 0 : i32
    %c0_i32_0 = arith.constant 0 : i32
    return %arg0, %c0_i32 : i32, i32
  }
  func.func @transform_1(%arg0: i32) -> (i32, i32) {
    %c0_i32 = arith.constant 0 : i32
    %c0_i32_0 = arith.constant 0 : i32
    %c0_i32_1 = arith.constant 0 : i32
    return %c0_i32, %c0_i32_0 : i32, i32
  }
  func.func @transform_2(%arg0: i32) -> (i32, i32) {
    %c0_i32 = arith.constant 0 : i32
    %c0_i32_0 = arith.constant 0 : i32
    %c0_i32_1 = arith.constant 0 : i32
    return %c0_i32, %c0_i32_0 : i32, i32
  }
  func.func @transform_3(%arg0: i32) -> (i32, i32) {
    %c0_i32 = arith.constant 0 : i32
    %c0_i32_0 = arith.constant 0 : i32
    %c0_i32_1 = arith.constant 0 : i32
    return %c0_i32, %c0_i32_0 : i32, i32
  }
  func.func @transform_4(%arg0: i32) -> (i32, i32) {
    %c0_i32 = arith.constant 0 : i32
    %c0_i32_0 = arith.constant 0 : i32
    %c0_i32_1 = arith.constant 0 : i32
    return %c0_i32, %c0_i32_0 : i32, i32
  }
  func.func @transform_5(%arg0: i32) -> (i32, i32) {
    %c0_i32 = arith.constant 0 : i32
    %c0_i32_0 = arith.constant 0 : i32
    %c0_i32_1 = arith.constant 0 : i32
    return %c0_i32, %c0_i32_0 : i32, i32
  }
  func.func @transform_6(%arg0: i32) -> (i32, i32) {
    %c0_i32 = arith.constant 0 : i32
    %c0_i32_0 = arith.constant 0 : i32
    return %arg0, %c0_i32 : i32, i32
  }
  func.func @transform_7(%arg0: i32) -> (i32, i32) {
    %c0_i32 = arith.constant 0 : i32
    %c0_i32_0 = arith.constant 0 : i32
    %c0_i32_1 = arith.constant 0 : i32
    return %c0_i32, %c0_i32_0 : i32, i32
  }
  func.func @transform_8(%arg0: i32) -> (i32, i32) {
    %c0_i32 = arith.constant 0 : i32
    %c0_i32_0 = arith.constant 0 : i32
    %c0_i32_1 = arith.constant 0 : i32
    return %c0_i32, %c0_i32_0 : i32, i32
  }
}

</mosaic_0001>

<bundles_post_ra>
// kernel: tpu_custom_call.1
= control target key start
LH: loop header
LB: loop body
LE: loop exit
PB: predicated region body
PF: predicated region fallthrough
CT: control target
= control target key end

     0   :  { %14 = vsyncpa [#allocation5], 0  ;;  %s2758_s0 = inlined_call_operand.hbm [shape: bf16[64,128], index: 0, kind: input, shape index: {}]   ;;  %s2759_s1 = inlined_call_operand.hbm [shape: bf16[128,512], index: 1, kind: input, shape index: {}]   ;;  %s2760_s2 = inlined_call_operand.hbm [shape: bf16[128,512], index: 2, kind: input, shape index: {}]   ;;  %s2761_s3 = inlined_call_operand.hbm [shape: f32[1,512], index: 3, kind: input, shape index: {}]   ;;  %s2762_s4 = inlined_call_operand.vmem [shape: f32[8,128], index: 4, kind: input, shape index: {}]   ;;  %s2763_s5 = inlined_call_operand.vmem [shape: f32[8,128], index: 5, kind: input, shape index: {}]   ;;  %s2764_s6 = inlined_call_operand.hbm [shape: bf16[64,128], index: 6, kind: output, shape index: {0}]   ;;  %s2765_s7 = inlined_call_operand.hbm [shape: f32[8,128], index: 7, kind: output, shape index: {1}]   ;;  %s2766_s8 = inlined_call_operand.hbm [shape: f32[8,128], index: 8, kind: output, shape index: {2}]  }
   0x1   :  { %16 = vsyncpa [#allocation5 + $0x1], 0 }
   0x2   :  { %17 = vsyncpa [#allocation8], 0 }
   0x3   :  { %18 = vsyncpa [#allocation11], 0 }
   0x4   :  { %19 = vsyncpa [#allocation6], 0 }
   0x5   :  { %21 = vsyncpa [#allocation6 + $0x1], 0 }
   0x6   :  { %22 = vsyncpa [#allocation14], 0  ;;  %s2190_s27 = smov 0   ;;  %s2192_s28 = smov 0  }
   0x7   :  { %s2194_s29 = smov 0   ;;  %s2196_s30 = smov 0  }
   0x8 LB: > { %2774 = sst [smem:[#allocation21_spill]] %s2117_s27  ;;  %s2211_s9 = sadd.s32 4294967295, %s2129_s30   ;;  %s2129_s30 = sphi %s2196_s30, %s2821_s30   ;;  %s2125_s29 = sphi %s2194_s29, %s2820_s29   ;;  %s2121_s28 = sphi %s2192_s28, %s2819_s28   ;;  %s2117_s27 = sphi %s2190_s27, %s2818_s27  }
   0x9   : > { %s1519_s10 = sadd.s32 4294967294, %s2129_s30   ;;  %p48_p0 = scmp.ne.s32.totalorder %s2121_s28, %s2117_s27 }
   0xa   : > { %p2767_p1 = scmp.eq.s32.totalorder %s2211_s9, 0  ;;  %p183_p3 = scmp.eq.s32.totalorder %s1519_s10, 1 }
   0xb   : > { %p1520_p5 = scmp.ge.s32.totalorder %s2129_s30, 1  ;;  %p232_p7 = scmp.lt.s32.totalorder %s2129_s30, 3 }
   0xc   : > { %p2220_p4 = por %p2767_p1, %p48_p0  ;;  %p2225_p6 = por %p183_p3, %p48_p0 }
   0xd   : > { %p2231_p9 = pnand %p1520_p5, %p232_p7  ;;  %s2131_s14 = smov [#allocation7]  }
   0xe   : > { %s2775_s11 = scalar_select %p2220_p4, 1, 0 }
   0xf   : > { %s2776_s12 = scalar_select %p2225_p6, 1, 0 }
  0x10   : > { %s2778_s13 = scalar_select %p2231_p9, 1, 0 }
  0x11   : > { %2777 = sst [smem:[#allocation22_spill]] %s2776_s12  ;;  %s244_s15 = sshll.u32 %s2131_s14, 4  ;;  %s2235_s15 = int_to_ptr.vmem [resolvable:$true] %s244_s15 }
  0x12   : > { %p1649_p10 = pneg %p2231_p9  ;;  %s2132_s17 = smov [#allocation9]  }
  0x13   : > { %s257_s18 = sshll.u32 %s2132_s17, 4  ;;  %s2133_s19 = smov [#allocation10]   ;;  %s2246_s18 = int_to_ptr.vmem [resolvable:$true] %s257_s18 }
  0x14   : > { %p2242_p12 = pnand %p1649_p10, %p2767_p1  ;;  %s2248_s20 = sshll.u32 %s2133_s19, 4  ;;  %s272_s20 = int_to_ptr.vmem [resolvable:$true] %s2248_s20 }
  0x15   : > { %s1885_s23 = scalar_lea.hbm %s2759_s1, 4096 }
  0x16   : > { %p1886_p13 = scmp.ne.s32.totalorder %s2759_s1, %s1885_s23  ;;  %p2258_p0 = pneg %p2242_p12 }
  0x17   : > { %p1892_p7 = scmp.lt.u32.totalorder %s1885_s23, %s2759_s1 }
  0x18   : > { %p1888_p3 = pnand %p2258_p0, %p1886_p13 }
  0x1a   : > { %p1889_p5 = pneg %p1888_p3 }
  0x1c   : > { %p1894_p10 = pnand %p1892_p7, %p1889_p5 }
  0x1e   : > { %1897 = shalt.err (!%p1894_p10)
}
  0x1f   : > { %s1898_s17 = scalar_lea.vmem %s2235_s15, 4096  ;;  %p1906_p2 = scmp.lt.s32.totalorder %s2235_s15, %s2235_s15 }
  0x20   : > { %p1899_p11 = scmp.ne.s32.totalorder %s2235_s15, %s1898_s17  ;;  %p1907_p6 = scmp.lt.s32.totalorder %s1898_s17, %s1898_s17 }
  0x22   : > { %p1901_p8 = pnand %p1899_p11, %p2258_p0  ;;  %p1908_p13 = por %p1907_p6, %p1906_p2 }
  0x24   : > { %p1902_p1 = pneg %p1901_p8 }
  0x26   : > { %p1909_p3 = pnand %p1908_p13, %p1902_p1 }
  0x28   : > { %1912 = shalt.err (!%p1909_p3)
}
  0x29   : > { %s2134_s19 = smov 256   ;;  %s2135_s21 = smov 16  }
  0x2a   : > { %1652 = dma.hbm_to_vmem [thread:$0]  (!%p2242_p12), %s2759_s1, 4096, %s2235_s15, [#allocation8], %s2134_s19, %s2134_s19, %s2135_s21  }
  0x2b   : > { %s1913_s10 = scalar_lea.hbm %s2760_s2, 4096 }
  0x2c   : > { %p1914_p2 = scmp.ne.s32.totalorder %s2760_s2, %s1913_s10  ;;  %p1920_p8 = scmp.lt.u32.totalorder %s1913_s10, %s2760_s2 }
  0x2e   : > { %p1916_p1 = pnand %p1914_p2, %p2258_p0 }
  0x30   : > { %p1917_p6 = pneg %p1916_p1 }
  0x32   : > { %p1922_p11 = pnand %p1920_p8, %p1917_p6 }
  0x34   : > { %1925 = shalt.err (!%p1922_p11)
}
  0x35   : > { %s1926_s15 = scalar_lea.vmem %s2246_s18, 4096  ;;  %p1934_p13 = scmp.lt.s32.totalorder %s2246_s18, %s2246_s18 }
  0x36   : > { %p1927_p5 = scmp.ne.s32.totalorder %s2246_s18, %s1926_s15  ;;  %p1935_p3 = scmp.lt.s32.totalorder %s1926_s15, %s1926_s15 }
  0x38   : > { %p1929_p7 = pnand %p1927_p5, %p2258_p0  ;;  %p1936_p2 = por %p1935_p3, %p1934_p13 }
  0x3a   : > { %p1930_p10 = pneg %p1929_p7 }
  0x3c   : > { %p1937_p1 = pnand %p1936_p2, %p1930_p10 }
  0x3e   : > { %1940 = shalt.err (!%p1937_p1)
}
  0x3f   : > { %1655 = dma.hbm_to_vmem [thread:$0]  (!%p2242_p12), %s2760_s2, 4096, %s2246_s18, [#allocation8], %s2134_s19, %s2134_s19, %s2135_s21  }
  0x40   : > { %s1941_s24 = scalar_lea.hbm %s2761_s3, 64 }
  0x41   : > { %p1942_p6 = scmp.ne.s32.totalorder %s2761_s3, %s1941_s24  ;;  %p1948_p5 = scmp.lt.u32.totalorder %s1941_s24, %s2761_s3 }
  0x43   : > { %p1944_p8 = pnand %p1942_p6, %p2258_p0 }
  0x45   : > { %p1945_p11 = pneg %p1944_p8 }
  0x47   : > { %p1950_p7 = pnand %p1948_p5, %p1945_p11 }
  0x49   : > { %1953 = shalt.err (!%p1950_p7)
}
  0x4a   : > { %s1954_s15 = scalar_lea.vmem %s272_s20, 64  ;;  %p1962_p2 = scmp.lt.s32.totalorder %s272_s20, %s272_s20 }
  0x4b   : > { %p1955_p10 = scmp.ne.s32.totalorder %s272_s20, %s1954_s15  ;;  %p1963_p1 = scmp.lt.s32.totalorder %s1954_s15, %s1954_s15 }
  0x4d   : > { %p1957_p13 = pnand %p1955_p10, %p2258_p0  ;;  %p1964_p4 = por %p1963_p1, %p1962_p2 }
  0x4f   : > { %p1958_p3 = pneg %p1957_p13 }
  0x51   : > { %p1965_p9 = pnand %p1964_p4, %p1958_p3 }
  0x53   : > { %1968 = shalt.err (!%p1965_p9)
}
  0x54   : > { %1658 = dma.hbm_to_vmem [thread:$0]  (!%p2242_p12), %s2761_s3, 64, %s272_s20, [#allocation11]  }
  0x55   : > { %s2322_s26 = sadd.s32 1, %s2129_s30   ;;  %s35_s16 = sadd.s32 1, %s2125_s29 }
  0x56   : > { %s32_s21 = ssub.s32 %s2129_s30, %s2322_s26  ;;  %p42_p9 = scmp.ne.s32.totalorder %s2125_s29, %s2121_s28 }
  0x57   : > { %p33_p4 = scmp.eq.s32.totalorder %s32_s21, 0  ;;  %p43_p0 = scmp.eq.s32.totalorder %s2129_s30, 0 }
  0x58   : > { %p1670_p6 = scmp.lt.s32.totalorder %s2129_s30, 2  ;;  %p2781_p11 = scmp.eq.s32.totalorder %s2211_s9, 1 }
  0x59   : > { %s2332_s27 = scalar_select %p33_p4, %s2125_s29, %s35_s16  }
  0x5a   : > { %p44_p8 = por %p43_p0, %p42_p9  ;;  %p2336_p5 = por %p2781_p11, %p42_p9 }
  0x5b   : > { %s288_s22 = sand.u32 1, %s2125_s29   ;;  %s1623_s23 = sshll.u32 %s2129_s30, 8 }
  0x5c   : > { %s1525_s20 = sshll.u32 %s288_s22, 4  ;;  %s2345_s10 = scalar_lea.hbm %s2758_s0, %s1623_s23 }
  0x5d   : > { %s292_s14 = scalar_lea.vmem [#allocation4], %s1525_s20  ;;  %p2347_p12 = pnand %p1670_p6, %p44_p8 }
  0x5e   : > { %s299_s17 = sshll.u32 %s292_s14, 4  ;;  %s2353_s18 = scalar_lea.sflag [#allocation5], %s288_s22  ;;  %s2351_s17 = int_to_ptr.vmem [resolvable:$true] %s299_s17 }
  0x5f   : > { %s1969_s19 = scalar_lea.hbm %s2345_s10, 256  ;;  %p1971_p10 = pneg %p2347_p12 }
  0x60   : > { %p1970_p7 = scmp.ne.s32.totalorder %s2345_s10, %s1969_s19  ;;  %s1974_s23 = scalar_lea.hbm %s2758_s0, 512 }
  0x61   : > { %p1975_p2 = scmp.lt.u32.totalorder %s2345_s10, %s2758_s0  ;;  %p1976_p1 = scmp.lt.u32.totalorder %s1974_s23, %s1969_s19 }
  0x62   : > { %p1972_p13 = pnand %p1971_p10, %p1970_p7  ;;  %p1978_p9 = scmp.lt.u32.totalorder %s1969_s19, %s2345_s10 }
  0x63   : > { %p1977_p4 = por %p1976_p1, %p1975_p2 }
  0x64   : > { %p1973_p3 = pneg %p1972_p13 }
  0x65   : > { %p1979_p0 = por %p1978_p9, %p1977_p4 }
  0x67   : > { %p1980_p6 = pnand %p1979_p0, %p1973_p3 }
  0x69   : > { %1983 = shalt.err (!%p1980_p6)
}
  0x6a   : > { %s1984_s22 = scalar_lea.vmem %s2351_s17, 256  ;;  %s2136_s25 = smov [#allocation4]  }
  0x6b   : > { %p1985_p8 = scmp.ne.s32.totalorder %s2351_s17, %s1984_s22  ;;  %s1989_s14 = sshll.u32 %s2136_s25, 4  ;;  %s1990_s14 = int_to_ptr.vmem [resolvable:$false] %s1989_s14 }
  0x6c   : > { %s1991_s21 = scalar_lea.vmem %s1990_s14, 512  ;;  %p1992_p13 = scmp.lt.s32.totalorder %s2351_s17, %s1990_s14 }
  0x6d   : > { %p1987_p11 = pnand %p1985_p8, %p1971_p10  ;;  %p1993_p2 = scmp.lt.s32.totalorder %s1991_s21, %s1984_s22 }
  0x6f   : > { %p1988_p7 = pneg %p1987_p11  ;;  %p1994_p1 = por %p1993_p2, %p1992_p13 }
  0x71   : > { %p1995_p4 = pnand %p1994_p1, %p1988_p7 }
  0x73   : > { %1998 = shalt.err (!%p1995_p4)
}
  0x74   : > { %s2137_s19 = smov 64   ;;  %s2138_s16 = smov 4  }
  0x75   : > { %1662 = dma.hbm_to_vmem [thread:$0]  (!%p2347_p12), %s2345_s10, 256, %s2351_s17, %s2353_s18, %s2137_s19, %s2137_s19, %s2138_s16  }
  0x76   : > { %p2784_p10 = scmp.ne.s32.totalorder %s2778_s13, 0 }
  0x78   : > { %311 = sbr.rel (%p2784_p10) target bundleno = 1330 (0x532), region = 44 }
  0x7f   : > { %s2384_s23 = sand.u32 1, %s2121_s28   ;;  %p2785_p3 = scmp.ne.s32.totalorder %s2775_s11, 0 }
  0x80   : > { %s1529_s20 = sshll.u32 %s2384_s23, 4  ;;  %s314_s24 = scalar_lea.sflag [#allocation5], %s2384_s23 }
  0x81   : > { %s2388_s22 = scalar_lea.vmem [#allocation4], %s1529_s20 }
  0x82   : > { %2096 = dma.done.wait (%p2785_p3), %s314_s24, 256  }
  0x83   : > { %2098 = vsyncadd (%p2785_p3), %s314_s24, 4294967040  ;;  %p2786_p12 = scmp.eq.s32.totalorder %s2211_s9, 0 }
  0x85   : > { %2100 = dma.done.wait (%p2786_p12), [#allocation8], 8192   ;;  %p2787_p9 = pmov %p2786_p12 }
  0x87   : > { %2102 = vsyncadd (%p2787_p9), [#allocation8], 4294959104  ;;  %p2788_p0 = pmov %p2787_p9 }
  0x89   : > { %2104 = dma.done.wait (%p2788_p0), [#allocation11], 64   ;;  %p2789_p6 = pmov %p2788_p0 }
  0x8a   : > { %s2402_s13 = scalar_lea.vmem [#allocation12], %s1529_s20  ;;  %p2790_p8 = scmp.ne.s32.totalorder %s2211_s9, 0 }
  0x8b   : > { %2106 = vsyncadd (%p2789_p6), [#allocation11], 4294967232  ;;  %v369_v0 = vld [vmem:[%s2762_s4] sm:$0xff] (!%p2790_p8) }
  0x8c   : > { %368 = sbr.rel (%p2790_p8) target bundleno = 147 (0x93), region = 64  ;;  %v372_v1 = vld [vmem:[%s2763_s5] sm:$0xff] (!%p2790_p8)  ;;  %v370_v2 = vpack.c.bf16 (!%p2790_p8), %v369_v0, %v369_v0 }
  0x8d   : > { %373 = vst [vmem:[#allocation3] sm:$0xff] (!%p2790_p8), %v372_v1 }
  0x8e   : > { %371 = vst [vmem:[#allocation2] sm:$0xf] (!%p2790_p8), %v370_v2 }
  0x93 PF: > { %v1723_v3 = vld [vmem:[#allocation7 + $0x4] ss:$16 sps:$4 sm:$0xff]   ;;  %v1725_v4 = vld [vmem:[#allocation7 + $0xc] ss:$16 sps:$4 sm:$0xff]   ;;  %v2772_v5 = vmov 0   ;;  %p1613_p11 = scmp.ne.s32.totalorder %s2211_s9, 1 }
  0x94   : > { %636 = vmatprep.mubr.bf16.mxu0 %v2772_v5  ;;  %689 = vmatprep.mubr.bf16.mxu1 %v2772_v5  ;;  %v1727_v6 = vld [vmem:[#allocation7] ss:$16 sps:$4 sm:$0xff]   ;;  %v1728_v7 = vld [vmem:[#allocation7 + $0x8] ss:$16 sps:$4 sm:$0xff]   ;;  %v1729_v8 = vld [vmem:[#allocation7 + $0x24] ss:$16 sps:$4 sm:$0xff]  }
  0x95   : > { %604 = vmatprep.subr.bf16.mxu0 %v1723_v3  ;;  %657 = vmatprep.subr.bf16.mxu1 %v1725_v4  ;;  %v1731_v9 = vld [vmem:[#allocation7 + $0x2c] ss:$16 sps:$4 sm:$0xff]   ;;  %v1733_v10 = vld [vmem:[#allocation7 + $0x20] ss:$16 sps:$4 sm:$0xff]   ;;  %v1734_v11 = vld [vmem:[#allocation7 + $0x28] ss:$16 sps:$4 sm:$0xff]  }
  0x96   : > { %605 = vmatpush1.bf16.msra.mxu0 %v1727_v6  ;;  %658 = vmatpush1.bf16.msra.mxu1 %v1728_v7  ;;  %v1735_v12 = vld [vmem:[#allocation7 + $0x44] ss:$16 sps:$4 sm:$0xff]   ;;  %v1737_v13 = vld [vmem:[#allocation7 + $0x4c] ss:$16 sps:$4 sm:$0xff]   ;;  %v1739_v14 = vld [vmem:[#allocation7 + $0x40] ss:$16 sps:$4 sm:$0xff]  }
  0x97   : > { %606 = vmatprep.subr.bf16.mxu0 %v1729_v8  ;;  %659 = vmatprep.subr.bf16.mxu1 %v1731_v9  ;;  %v1740_v15 = vld [vmem:[#allocation7 + $0x48] ss:$16 sps:$4 sm:$0xff]   ;;  %v1741_v16 = vld [vmem:[#allocation7 + $0x64] ss:$16 sps:$4 sm:$0xff]   ;;  %v1743_v17 = vld [vmem:[#allocation7 + $0x6c] ss:$16 sps:$4 sm:$0xff]   ;;  %v412_v8 = vlaneseq }
  0x98   : > { %v1745_v18 = vld [vmem:[#allocation7 + $0x60] ss:$16 sps:$4 sm:$0xff]   ;;  %v1746_v19 = vld [vmem:[#allocation7 + $0x68] ss:$16 sps:$4 sm:$0xff]   ;;  %v1747_v20 = vld [vmem:[#allocation7 + $0x84] ss:$16 sps:$4 sm:$0xff]  }
  0x99   : > { %v1749_v21 = vld [vmem:[#allocation7 + $0x8c] ss:$16 sps:$4 sm:$0xff]   ;;  %v1751_v22 = vld [vmem:[#allocation7 + $0x80] ss:$16 sps:$4 sm:$0xff]   ;;  %v1752_v23 = vld [vmem:[#allocation7 + $0x88] ss:$16 sps:$4 sm:$0xff]  }
  0x9a   : > { %607 = vmatpush1.bf16.msra.mxu0 %v1733_v10  ;;  %660 = vmatpush1.bf16.msra.mxu1 %v1734_v11  ;;  %v1753_v24 = vld [vmem:[#allocation7 + $0xa4] ss:$16 sps:$4 sm:$0xff]   ;;  %v1755_v25 = vld [vmem:[#allocation7 + $0xac] ss:$16 sps:$4 sm:$0xff]   ;;  %v1757_v26 = vld [vmem:[#allocation7 + $0xa0] ss:$16 sps:$4 sm:$0xff]  }
  0x9b   : > { %608 = vmatprep.subr.bf16.mxu0 %v1735_v12  ;;  %661 = vmatprep.subr.bf16.mxu1 %v1737_v13  ;;  %v1758_v27 = vld [vmem:[#allocation7 + $0xa8] ss:$16 sps:$4 sm:$0xff]   ;;  %v1759_v28 = vld [vmem:[#allocation7 + $0xc4] ss:$16 sps:$4 sm:$0xff]   ;;  %v1761_v29 = vld [vmem:[#allocation7 + $0xcc] ss:$16 sps:$4 sm:$0xff]  }
  0x9c   : > { %v1763_v30 = vld [vmem:[#allocation7 + $0xc0] ss:$16 sps:$4 sm:$0xff]   ;;  %v1764_v31 = vld [vmem:[#allocation7 + $0xc8] ss:$16 sps:$4 sm:$0xff]   ;;  %v1765_v32 = vld [vmem:[#allocation7 + $0xe4] ss:$16 sps:$4 sm:$0xff]  }
  0x9d   : > { %v1767_v33 = vld [vmem:[#allocation7 + $0xec] ss:$16 sps:$4 sm:$0xff]   ;;  %v1769_v34 = vld [vmem:[#allocation7 + $0xe0] ss:$16 sps:$4 sm:$0xff]   ;;  %v1770_v35 = vld [vmem:[#allocation7 + $0xe8] ss:$16 sps:$4 sm:$0xff]  }
  0x9e   : > { %609 = vmatpush1.bf16.msra.mxu0 %v1739_v14  ;;  %662 = vmatpush1.bf16.msra.mxu1 %v1740_v15  ;;  %v2414_v36 = vld [vmem:[#allocation9 + $0x4] ss:$16 sps:$4 sm:$0xff]   ;;  %v2416_v37 = vld [vmem:[#allocation9 + $0xc] ss:$16 sps:$4 sm:$0xff]   ;;  %v2419_v39 = vld [vmem:[#allocation9] ss:$16 sps:$4 sm:$0xff]  }
  0x9f   : > { %610 = vmatprep.subr.bf16.mxu0 %v1741_v16  ;;  %663 = vmatprep.subr.bf16.mxu1 %v1743_v17  ;;  %v1771_v38 = vld [vmem:[%s2388_s22] sm:$0xff]   ;;  %v2421_v40 = vld [vmem:[#allocation9 + $0x8] ss:$16 sps:$4 sm:$0xff]   ;;  %v2427_v42 = vld [vmem:[#allocation9 + $0x2c] ss:$16 sps:$4 sm:$0xff]   ;;  %v413_v9 = vshrl.u32 %v412_v8, 7 }
  0xa0   : > { %v2423_v41 = vld [vmem:[#allocation9 + $0x24] ss:$16 sps:$4 sm:$0xff]   ;;  %v2429_v43 = vld [vmem:[#allocation9 + $0x20] ss:$16 sps:$4 sm:$0xff]   ;;  %v2431_v44 = vld [vmem:[#allocation9 + $0x28] ss:$16 sps:$4 sm:$0xff]  }
  0xa1   : > { %v2435_v45 = vld [vmem:[#allocation9 + $0x44] ss:$16 sps:$4 sm:$0xff]   ;;  %v2439_v46 = vld [vmem:[#allocation9 + $0x4c] ss:$16 sps:$4 sm:$0xff]   ;;  %v2441_v47 = vld [vmem:[#allocation9 + $0x40] ss:$16 sps:$4 sm:$0xff]  }
  0xa2   : > { %611 = vmatpush1.bf16.msra.mxu0 %v1745_v18  ;;  %664 = vmatpush1.bf16.msra.mxu1 %v1746_v19  ;;  %v1806_v48 = vld [vmem:[%s2388_s22 + $0x8] sm:$0xff]   ;;  %v2452_v50 = vld [vmem:[#allocation9 + $0x64] ss:$16 sps:$4 sm:$0xff]   ;;  %v2458_v52 = vld [vmem:[#allocation9 + $0x60] ss:$16 sps:$4 sm:$0xff]   ;;  %v414_v10 = vsub.s32 0, %v413_v9 }
  0xa3   : > { %612 = vmatprep.subr.bf16.mxu0 %v1747_v20  ;;  %665 = vmatprep.subr.bf16.mxu1 %v1749_v21  ;;  %v2448_v49 = vld [vmem:[#allocation9 + $0x48] ss:$16 sps:$4 sm:$0xff]   ;;  %v2454_v51 = vld [vmem:[#allocation9 + $0x6c] ss:$16 sps:$4 sm:$0xff]   ;;  %v2464_v54 = vld [vmem:[#allocation9 + $0x84] ss:$16 sps:$4 sm:$0xff]  }
  0xa4   : > { %v2460_v53 = vld [vmem:[#allocation9 + $0x68] ss:$16 sps:$4 sm:$0xff]   ;;  %v2466_v55 = vld [vmem:[#allocation9 + $0x8c] ss:$16 sps:$4 sm:$0xff]   ;;  %v2472_v56 = vld [vmem:[#allocation9 + $0x80] ss:$16 sps:$4 sm:$0xff]  }
  0xa5   : > { %v2474_v57 = vld [vmem:[#allocation9 + $0x88] ss:$16 sps:$4 sm:$0xff]   ;;  %v2478_v58 = vld [vmem:[#allocation9 + $0xa4] ss:$16 sps:$4 sm:$0xff]   ;;  %v2480_v59 = vld [vmem:[#allocation9 + $0xac] ss:$16 sps:$4 sm:$0xff]  }
  0xa6   : > { %613 = vmatpush1.bf16.msra.mxu0 %v1751_v22  ;;  %666 = vmatpush1.bf16.msra.mxu1 %v1752_v23  ;;  %v2484_v60 = vld [vmem:[#allocation9 + $0xa0] ss:$16 sps:$4 sm:$0xff]   ;;  %v2486_v61 = vld [vmem:[#allocation9 + $0xa8] ss:$16 sps:$4 sm:$0xff]   ;;  %v2490_v62 = vld [vmem:[#allocation9 + $0xc4] ss:$16 sps:$4 sm:$0xff]  }
  0xa7   : > { %614 = vmatprep.subr.bf16.mxu0 %v1753_v24  ;;  %667 = vmatprep.subr.bf16.mxu1 %v1755_v25  ;;  %v2492_v63 = vld [vmem:[#allocation9 + $0xcc] ss:$16 sps:$4 sm:$0xff]   ;;  %v2496_v0 = vld [vmem:[#allocation9 + $0xc0] ss:$16 sps:$4 sm:$0xff]   ;;  %v2498_v1 = vld [vmem:[#allocation9 + $0xc8] ss:$16 sps:$4 sm:$0xff]  }
  0xa8   : > { %v2502_v2 = vld [vmem:[#allocation9 + $0xe4] ss:$16 sps:$4 sm:$0xff]   ;;  %v2504_v3 = vld [vmem:[#allocation9 + $0xec] ss:$16 sps:$4 sm:$0xff]   ;;  %v2508_v4 = vld [vmem:[#allocation9 + $0xe0] ss:$16 sps:$4 sm:$0xff]  }
  0xa9   : > { %v2510_v6 = vld [vmem:[#allocation9 + $0xe8] ss:$16 sps:$4 sm:$0xff]   ;;  %v742_v7 = vld [vmem:[#allocation2] sm:$0xf]  ;;  %v422_v11 = vsub.s32 2, %v413_v9  ;;  %v426_v13 = vsub.s32 3, %v413_v9 }
  0xaa   : > { %615 = vmatpush1.bf16.msra.mxu0 %v1757_v26  ;;  %668 = vmatpush1.bf16.msra.mxu1 %v1758_v27  ;;  %v410_v12 = vld [vmem:[#allocation10] sm:$0xf]  ;;  %v418_v14 = vsub.s32 1, %v413_v9 }
  0xab   : > { %616 = vmatprep.subr.bf16.mxu0 %v1759_v28  ;;  %669 = vmatprep.subr.bf16.mxu1 %v1761_v29  ;;  %v415_v15 = vrot.slane %v410_v12, %v414_v10  ;;  %v423_v16 = vrot.slane %v410_v12, %v422_v11  ;;  %v427_v19 = vrot.slane %v410_v12, %v426_v13 }
  0xac   : > { %v419_v22 = vrot.slane %v410_v12, %v418_v14 }
  0xae   : > { %617 = vmatpush1.bf16.msra.mxu0 %v1763_v30  ;;  %670 = vmatpush1.bf16.msra.mxu1 %v1764_v31 }
  0xaf   : > { %618 = vmatprep.subr.bf16.mxu0 %v1765_v32  ;;  %671 = vmatprep.subr.bf16.mxu1 %v1767_v33 }
  0xb2   : > { %619 = vmatpush1.bf16.msra.mxu0 %v1769_v34  ;;  %672 = vmatpush1.bf16.msra.mxu1 %v1770_v35 }
  0xb3   : > { %904 = vmatprep.subr.bf16.mxu0 %v2414_v36  ;;  %945 = vmatprep.subr.bf16.mxu1 %v2416_v37 }
  0xb5   : > { %637 = vmatmul.mubr.bf16.vlgmr.msra.gmra.mrb[0].mxu0 %v1771_v38  ;;  %690 = vmatmul.mubr.bf16.vlgmr.msra.gmra.mrb[0].mxu1 %v1771_v38 }
  0xb6   : > { %905 = vmatpush1.bf16.msra.mxu0 %v2419_v39  ;;  %946 = vmatpush1.bf16.msra.mxu1 %v2421_v40 }
  0xb7   : > { %906 = vmatprep.subr.bf16.mxu0 %v2423_v41  ;;  %947 = vmatprep.subr.bf16.mxu1 %v2427_v42 }
  0xb8   : > { %646 = vmatprep.mubr.bf16.mxu0 %v2772_v5  ;;  %699 = vmatprep.mubr.bf16.mxu1 %v2772_v5 }
  0xba   : > { %907 = vmatpush1.bf16.msra.mxu0 %v2429_v43  ;;  %948 = vmatpush1.bf16.msra.mxu1 %v2431_v44 }
  0xbb   : > { %908 = vmatprep.subr.bf16.mxu0 %v2435_v45  ;;  %949 = vmatprep.subr.bf16.mxu1 %v2439_v46 }
  0xbd   : > { %647 = vmatmul.mubr.bf16.gmra.mrb[4].mxu0 %v1806_v48  ;;  %700 = vmatmul.mubr.bf16.gmra.mrb[4].mxu1 %v1806_v48 }
  0xbe   : > { %909 = vmatpush1.bf16.msra.mxu0 %v2441_v47  ;;  %950 = vmatpush1.bf16.msra.mxu1 %v2448_v49 }
  0xbf   : > { %910 = vmatprep.subr.bf16.mxu0 %v2452_v50  ;;  %951 = vmatprep.subr.bf16.mxu1 %v2454_v51 }
  0xc0   : > { %936 = vmatprep.mubr.bf16.mxu0 %v2772_v5  ;;  %977 = vmatprep.mubr.bf16.mxu1 %v2772_v5 }
  0xc2   : > { %911 = vmatpush1.bf16.msra.mxu0 %v2458_v52  ;;  %952 = vmatpush1.bf16.msra.mxu1 %v2460_v53 }
  0xc3   : > { %912 = vmatprep.subr.bf16.mxu0 %v2464_v54  ;;  %953 = vmatprep.subr.bf16.mxu1 %v2466_v55 }
  0xc6   : > { %913 = vmatpush1.bf16.msra.mxu0 %v2472_v56  ;;  %954 = vmatpush1.bf16.msra.mxu1 %v2474_v57 }
  0xc7   : > { %914 = vmatprep.subr.bf16.mxu0 %v2478_v58  ;;  %955 = vmatprep.subr.bf16.mxu1 %v2480_v59 }
  0xca   : > { %915 = vmatpush1.bf16.msra.mxu0 %v2484_v60  ;;  %956 = vmatpush1.bf16.msra.mxu1 %v2486_v61 }
  0xcb   : > { %916 = vmatprep.subr.bf16.mxu0 %v2490_v62  ;;  %957 = vmatprep.subr.bf16.mxu1 %v2492_v63 }
  0xce   : > { %917 = vmatpush1.bf16.msra.mxu0 %v2496_v0  ;;  %958 = vmatpush1.bf16.msra.mxu1 %v2498_v1 }
  0xcf   : > { %918 = vmatprep.subr.bf16.mxu0 %v2502_v2  ;;  %959 = vmatprep.subr.bf16.mxu1 %v2504_v3 }
  0xd2   : > { %919 = vmatpush1.bf16.msra.mxu0 %v2508_v4  ;;  %960 = vmatpush1.bf16.msra.mxu1 %v2510_v6 }
  0xd3   : > { %1016 = vmatprep.subr.bf16.mxu0 %v2414_v36  ;;  %1057 = vmatprep.subr.bf16.mxu1 %v2416_v37 }
  0xd5   : > { %937 = vmatmul.mubr.bf16.vlgmr.msra.gmra.mrb[8].mxu0 %v742_v7  ;;  %978 = vmatmul.mubr.bf16.vlgmr.msra.gmra.mrb[8].mxu1 %v742_v7 }
  0xd6   : > { %1017 = vmatpush1.bf16.msra.mxu0 %v2419_v39  ;;  %1058 = vmatpush1.bf16.msra.mxu1 %v2421_v40 }
  0xd7   : > { %1018 = vmatprep.subr.bf16.mxu0 %v2423_v41  ;;  %1059 = vmatprep.subr.bf16.mxu1 %v2427_v42 }
  0xd8   : > { %1048 = vmatprep.mubr.bf16.mxu0 %v2772_v5  ;;  %1089 = vmatprep.mubr.bf16.mxu1 %v2772_v5 }
  0xda   : > { %1019 = vmatpush1.bf16.msra.mxu0 %v2429_v43  ;;  %1060 = vmatpush1.bf16.msra.mxu1 %v2431_v44 }
  0xdb   : > { %1020 = vmatprep.subr.bf16.mxu0 %v2435_v45  ;;  %1061 = vmatprep.subr.bf16.mxu1 %v2439_v46 }
  0xde   : > { %1021 = vmatpush1.bf16.msra.mxu0 %v2441_v47  ;;  %1062 = vmatpush1.bf16.msra.mxu1 %v2448_v49 }
  0xdf   : > { %1022 = vmatprep.subr.bf16.mxu0 %v2452_v50  ;;  %1063 = vmatprep.subr.bf16.mxu1 %v2454_v51 }
  0xe2   : > { %1023 = vmatpush1.bf16.msra.mxu0 %v2458_v52  ;;  %1064 = vmatpush1.bf16.msra.mxu1 %v2460_v53 }
  0xe3   : > { %1024 = vmatprep.subr.bf16.mxu0 %v2464_v54  ;;  %1065 = vmatprep.subr.bf16.mxu1 %v2466_v55 }
  0xe6   : > { %1025 = vmatpush1.bf16.msra.mxu0 %v2472_v56  ;;  %1066 = vmatpush1.bf16.msra.mxu1 %v2474_v57 }
  0xe7   : > { %1026 = vmatprep.subr.bf16.mxu0 %v2478_v58  ;;  %1067 = vmatprep.subr.bf16.mxu1 %v2480_v59 }
  0xea   : > { %1027 = vmatpush1.bf16.msra.mxu0 %v2484_v60  ;;  %1068 = vmatpush1.bf16.msra.mxu1 %v2486_v61 }
  0xeb   : > { %1028 = vmatprep.subr.bf16.mxu0 %v2490_v62  ;;  %1069 = vmatprep.subr.bf16.mxu1 %v2492_v63 }
  0xee   : > { %1029 = vmatpush1.bf16.msra.mxu0 %v2496_v0  ;;  %1070 = vmatpush1.bf16.msra.mxu1 %v2498_v1 }
  0xef   : > { %1030 = vmatprep.subr.bf16.mxu0 %v2502_v2  ;;  %1071 = vmatprep.subr.bf16.mxu1 %v2504_v3 }
  0xf2   : > { %1031 = vmatpush1.bf16.msra.mxu0 %v2508_v4  ;;  %1072 = vmatpush1.bf16.msra.mxu1 %v2510_v6 }
  0xf3   : > { %1128 = vmatprep.subr.bf16.mxu0 %v2414_v36  ;;  %1169 = vmatprep.subr.bf16.mxu1 %v2416_v37 }
 0x188   : > { %v638_v17 = vpop.f32.mrb[0].mxu0  ;;  %v691_v18 = vpop.f32.mrb[0].mxu1 }
 0x189   : > { %v640_v20 = vpop.f32.mrb[1].mxu0  ;;  %v693_v21 = vpop.f32.mrb[1].mxu1 }
 0x18a   : > { %v642_v23 = vpop.f32.mrb[2].mxu0  ;;  %v695_v24 = vpop.f32.mrb[2].mxu1 }
 0x18b   : > { %v2552_v25 = vadd.f32 %v642_v23, %v415_v15  ;;  %v644_v26 = vpop.f32.mrb[3].mxu0  ;;  %v2554_v27 = vadd.f32 %v695_v24, %v423_v16  ;;  %v697_v28 = vpop.f32.mrb[3].mxu1  ;;  %v639_v24 = vadd.f32 %v638_v17, %v415_v15 }
 0x18c   : > { %v2556_v29 = vadd.f32 %v644_v26, %v419_v22  ;;  %v2558_v30 = vadd.f32 %v697_v28, %v427_v19  ;;  %v692_v26 = vadd.f32 %v691_v18, %v423_v16  ;;  %v641_v28 = vadd.f32 %v640_v20, %v419_v22 }
 0x190   : > { %v648_v31 = vpop.f32.mrb[4].mxu0  ;;  %v701_v32 = vpop.f32.mrb[4].mxu1 }
 0x191   : > { %v2560_v33 = vadd.f32 %v648_v31, %v415_v15  ;;  %v650_v34 = vpop.f32.mrb[5].mxu0  ;;  %v2562_v35 = vadd.f32 %v701_v32, %v423_v16  ;;  %v703_v38 = vpop.f32.mrb[5].mxu1  ;;  %v694_v31 = vadd.f32 %v693_v21, %v427_v19 }
 0x192   : > { %v2564_v48 = vadd.f32 %v650_v34, %v419_v22  ;;  %v652_v7 = vpop.f32.mrb[6].mxu0  ;;  %v2566_v8 = vadd.f32 %v703_v38, %v427_v19  ;;  %v705_v9 = vpop.f32.mrb[6].mxu1 }
 0x193   : > { %2791 = vst [vmem:[#allocation23_spill] sm:$0xff] %v2560_v33  ;;  %2792 = vst [vmem:[#allocation24_spill] sm:$0xff] %v2562_v35  ;;  %v2568_v10 = vadd.f32 %v652_v7, %v415_v15  ;;  %v654_v11 = vpop.f32.mrb[7].mxu0  ;;  %v2570_v12 = vadd.f32 %v705_v9, %v423_v16  ;;  %v707_v13 = vpop.f32.mrb[7].mxu1 }
 0x194   : > { %2793 = vst [vmem:[#allocation25_spill] sm:$0xff] %v2564_v48  ;;  %2794 = vst [vmem:[#allocation26_spill] sm:$0xff] %v2566_v8  ;;  %v2572_v14 = vadd.f32 %v654_v11, %v419_v22  ;;  %v2574_v23 = vadd.f32 %v707_v13, %v427_v19 }
 0x195   : > { %2795 = vst [vmem:[#allocation27_spill] sm:$0xff] %v2568_v10  ;;  %2796 = vst [vmem:[#allocation28_spill] sm:$0xff] %v2570_v12 }
 0x196   : > { %2797 = vst [vmem:[#allocation29_spill] sm:$0xff] %v2572_v14 }
 0x1a8   : > { %v938_v32 = vpop.f32.mrb[8].mxu0  ;;  %v979_v34 = vpop.f32.mrb[8].mxu1 }
 0x1a9   : > { %v986_v5 = vadd.f32 %v938_v32, %v639_v24  ;;  %v988_v38 = vadd.f32 %v979_v34, %v692_v26  ;;  %v940_v8 = vpop.f32.mrb[9].mxu0  ;;  %v981_v48 = vpop.f32.mrb[9].mxu1  ;;  %v2798_v26 = vmov 0  }
 0x1aa   : > { %v987_v7 = vadd.f32 %v940_v8, %v641_v28  ;;  %v989_v10 = vadd.f32 %v981_v48, %v694_v31  ;;  %v942_v35 = vpop.f32.mrb[10].mxu0  ;;  %v983_v9 = vpop.f32.mrb[10].mxu1 }
 0x1ab   : > { %v1601_v12 = vmul.f32 -1.442695, %v986_v5  ;;  %v943_v33 = vpop.f32.mrb[11].mxu0  ;;  %v984_v11 = vpop.f32.mrb[11].mxu1  ;;  %v1603_v15 = vmul.f32 -1.442695, %v988_v38 }
 0x1ac   : > { %v1602_v14 = vmul.f32 -1.442695, %v987_v7  ;;  %v743_v35 = vld [vmem:[#allocation3] sm:$0xff] }
 0x1ad   : > { %1821 = vpow2.f32 %v1601_v12 }
 0x1ae   : > { %1823 = vpow2.f32 %v1602_v14 }
 0x1af   : > { %1825 = vtanh.f32 %v989_v10 }
 0x1b0   : > { %1827 = vpow2.f32 %v1603_v15 }
 0x1b7   : > { %v1822_v16 = vpop.eup %1821 }
 0x1b8   : > { %v999_v17 = vadd.f32 1.0, %v1822_v16  ;;  %v1824_v18 = vpop.eup %1823 }
 0x1b9   : > { %v1000_v19 = vadd.f32 1.0, %v1824_v18  ;;  %v1826_v20 = vpop.eup %1825 }
 0x1ba   : > { %1829 = vrcp.f32 %v999_v17  ;;  %v1828_v21 = vpop.eup %1827 }
 0x1bb   : > { %1831 = vrcp.f32 %v1000_v19  ;;  %v1001_v48 = vadd.f32 1.0, %v1828_v21 }
 0x1bd   : > { %1833 = vrcp.f32 %v1001_v48 }
 0x1c4   : > { %v1830_v22 = vpop.eup %1829 }
 0x1c5   : > { %v1010_v5 = vmul.f32 %v1830_v22, %v1826_v20  ;;  %v1832_v33 = vpop.eup %1831 }
 0x1c6   : > { %v1009_v8 = vmul.f32 %v1832_v33, %v743_v35 }
 0x1c7   : > { %v1834_v10 = vpop.eup %1833 }
 0x1c8   : > { %v2576_v12 = vadd.f32 %v1010_v5, %v1009_v8 }
 0x1ca   : > { %1835 = vtanh.f32 %v2576_v12 }
 0x1d4   : > { %v1836_v13 = vpop.eup %1835 }
 0x1d5   : > { %v1013_v14 = vmul.f32 %v1836_v13, %v1834_v10 }
 0x1d7   : > { %v1014_v24 = vpack.c.bf16 %v1013_v14, %v1013_v14 }
 0x1d9   : > { %1015 = vst [vmem:[%s2402_s13] sm:$0xf] %v1014_v24  ;;  %1049 = vmatmul.mubr.bf16.vlgmr.msra.gmra.mrb[12].mxu0 %v1014_v24  ;;  %1090 = vmatmul.mubr.bf16.vlgmr.msra.gmra.mrb[12].mxu1 %v1014_v24 }
 0x1da   : > { %1129 = vmatpush1.bf16.msra.mxu0 %v2419_v39  ;;  %1170 = vmatpush1.bf16.msra.mxu1 %v2421_v40 }
 0x1db   : > { %1130 = vmatprep.subr.bf16.mxu0 %v2423_v41  ;;  %1171 = vmatprep.subr.bf16.mxu1 %v2427_v42 }
 0x1dc   : > { %1160 = vmatprep.mubr.bf16.mxu0 %v2798_v26  ;;  %1201 = vmatprep.mubr.bf16.mxu1 %v2798_v26 }
 0x1de   : > { %1131 = vmatpush1.bf16.msra.mxu0 %v2429_v43  ;;  %1172 = vmatpush1.bf16.msra.mxu1 %v2431_v44 }
 0x1df   : > { %1132 = vmatprep.subr.bf16.mxu0 %v2435_v45  ;;  %1173 = vmatprep.subr.bf16.mxu1 %v2439_v46 }
 0x1e2   : > { %1133 = vmatpush1.bf16.msra.mxu0 %v2441_v47  ;;  %1174 = vmatpush1.bf16.msra.mxu1 %v2448_v49 }
 0x1e3   : > { %1134 = vmatprep.subr.bf16.mxu0 %v2452_v50  ;;  %1175 = vmatprep.subr.bf16.mxu1 %v2454_v51 }
 0x1e6   : > { %1135 = vmatpush1.bf16.msra.mxu0 %v2458_v52  ;;  %1176 = vmatpush1.bf16.msra.mxu1 %v2460_v53 }
 0x1e7   : > { %1136 = vmatprep.subr.bf16.mxu0 %v2464_v54  ;;  %1177 = vmatprep.subr.bf16.mxu1 %v2466_v55 }
 0x1ea   : > { %1137 = vmatpush1.bf16.msra.mxu0 %v2472_v56  ;;  %1178 = vmatpush1.bf16.msra.mxu1 %v2474_v57 }
 0x1eb   : > { %1138 = vmatprep.subr.bf16.mxu0 %v2478_v58  ;;  %1179 = vmatprep.subr.bf16.mxu1 %v2480_v59 }
 0x1ee   : > { %1139 = vmatpush1.bf16.msra.mxu0 %v2484_v60  ;;  %1180 = vmatpush1.bf16.msra.mxu1 %v2486_v61 }
 0x1ef   : > { %1140 = vmatprep.subr.bf16.mxu0 %v2490_v62  ;;  %1181 = vmatprep.subr.bf16.mxu1 %v2492_v63 }
 0x1f2   : > { %1141 = vmatpush1.bf16.msra.mxu0 %v2496_v0  ;;  %1182 = vmatpush1.bf16.msra.mxu1 %v2498_v1 }
 0x1f3   : > { %1142 = vmatprep.subr.bf16.mxu0 %v2502_v2  ;;  %1183 = vmatprep.subr.bf16.mxu1 %v2504_v3 }
 0x1f6   : > { %1143 = vmatpush1.bf16.msra.mxu0 %v2508_v4  ;;  %1184 = vmatpush1.bf16.msra.mxu1 %v2510_v6 }
 0x1f7   : > { %1240 = vmatprep.subr.bf16.mxu0 %v2414_v36  ;;  %1281 = vmatprep.subr.bf16.mxu1 %v2416_v37 }
 0x2ac   : > { %v1050_v28 = vpop.f32.mrb[12].mxu0  ;;  %v1091_v31 = vpop.f32.mrb[12].mxu1 }
 0x2ad   : > { %v1098_v32 = vadd.f32 %v1050_v28, %v2552_v25  ;;  %v1100_v34 = vadd.f32 %v1091_v31, %v2554_v27  ;;  %v1052_v38 = vpop.f32.mrb[13].mxu0  ;;  %v1093_v7 = vpop.f32.mrb[13].mxu1 }
 0x2ae   : > { %v1099_v9 = vadd.f32 %v1052_v38, %v2556_v29  ;;  %v1101_v11 = vadd.f32 %v1093_v7, %v2558_v30  ;;  %v1054_v15 = vpop.f32.mrb[14].mxu0  ;;  %v1095_v16 = vpop.f32.mrb[14].mxu1  ;;  %v2803_v7 = vld [vmem:[#allocation27_spill] sm:$0xff] }
 0x2af   : > { %v1604_v17 = vmul.f32 -1.442695, %v1098_v32  ;;  %v1055_v18 = vpop.f32.mrb[15].mxu0  ;;  %v1096_v19 = vpop.f32.mrb[15].mxu1  ;;  %v1606_v37 = vmul.f32 -1.442695, %v1100_v34 }
 0x2b0   : > { %v1605_v36 = vmul.f32 -1.442695, %v1099_v9  ;;  %v2805_v18 = vld [vmem:[#allocation29_spill] sm:$0xff] }
 0x2b1   : > { %1837 = vpow2.f32 %v1604_v17 }
 0x2b2   : > { %1839 = vpow2.f32 %v1605_v36 }
 0x2b3   : > { %1841 = vtanh.f32 %v1101_v11  ;;  %v2804_v11 = vld [vmem:[#allocation28_spill] sm:$0xff] }
 0x2b4   : > { %1843 = vpow2.f32 %v1606_v37 }
 0x2bb   : > { %v1838_v20 = vpop.eup %1837 }
 0x2bc   : > { %v1111_v21 = vadd.f32 1.0, %v1838_v20  ;;  %v1840_v25 = vpop.eup %1839 }
 0x2bd   : > { %v1112_v27 = vadd.f32 1.0, %v1840_v25  ;;  %v1842_v29 = vpop.eup %1841 }
 0x2be   : > { %1845 = vrcp.f32 %v1111_v21  ;;  %v1844_v30 = vpop.eup %1843 }
 0x2bf   : > { %1847 = vrcp.f32 %v1112_v27  ;;  %v1113_v33 = vadd.f32 1.0, %v1844_v30 }
 0x2c1   : > { %1849 = vrcp.f32 %v1113_v33 }
 0x2c8   : > { %v1846_v22 = vpop.eup %1845 }
 0x2c9   : > { %v1122_v35 = vmul.f32 %v1846_v22, %v1842_v29  ;;  %v1848_v5 = vpop.eup %1847 }
 0x2ca   : > { %v1121_v48 = vmul.f32 %v1848_v5, %v2576_v12 }
 0x2cb   : > { %v1850_v10 = vpop.eup %1849 }
 0x2cc   : > { %v2619_v8 = vadd.f32 %v1122_v35, %v1121_v48 }
 0x2ce   : > { %1851 = vtanh.f32 %v2619_v8 }
 0x2d8   : > { %v1852_v13 = vpop.eup %1851 }
 0x2d9   : > { %v1125_v14 = vmul.f32 %v1852_v13, %v1850_v10 }
 0x2db   : > { %v1126_v24 = vpack.c.bf16 %v1125_v14, %v1125_v14 }
 0x2dd   : > { %1127 = vst [vmem:[%s2402_s13 + $0x4] sm:$0xf] %v1126_v24  ;;  %1161 = vmatmul.mubr.bf16.vlgmr.msra.gmra.mrb[16].mxu0 %v1126_v24  ;;  %1202 = vmatmul.mubr.bf16.vlgmr.msra.gmra.mrb[16].mxu1 %v1126_v24 }
 0x2de   : > { %1241 = vmatpush1.bf16.msra.mxu0 %v2419_v39  ;;  %1282 = vmatpush1.bf16.msra.mxu1 %v2421_v40 }
 0x2df   : > { %1242 = vmatprep.subr.bf16.mxu0 %v2423_v41  ;;  %1283 = vmatprep.subr.bf16.mxu1 %v2427_v42  ;;  %v2799_v41 = vld [vmem:[#allocation23_spill] sm:$0xff] }
 0x2e0   : > { %1272 = vmatprep.mubr.bf16.mxu0 %v2798_v26  ;;  %1313 = vmatprep.mubr.bf16.mxu1 %v2798_v26 }
 0x2e2   : > { %1243 = vmatpush1.bf16.msra.mxu0 %v2429_v43  ;;  %1284 = vmatpush1.bf16.msra.mxu1 %v2431_v44  ;;  %v2800_v43 = vld [vmem:[#allocation24_spill] sm:$0xff] }
 0x2e3   : > { %1244 = vmatprep.subr.bf16.mxu0 %v2435_v45  ;;  %1285 = vmatprep.subr.bf16.mxu1 %v2439_v46 }
 0x2e6   : > { %1245 = vmatpush1.bf16.msra.mxu0 %v2441_v47  ;;  %1286 = vmatpush1.bf16.msra.mxu1 %v2448_v49  ;;  %v2801_v47 = vld [vmem:[#allocation25_spill] sm:$0xff] }
 0x2e7   : > { %1246 = vmatprep.subr.bf16.mxu0 %v2452_v50  ;;  %1287 = vmatprep.subr.bf16.mxu1 %v2454_v51  ;;  %v2802_v50 = vld [vmem:[#allocation26_spill] sm:$0xff] }
 0x2ea   : > { %1247 = vmatpush1.bf16.msra.mxu0 %v2458_v52  ;;  %1288 = vmatpush1.bf16.msra.mxu1 %v2460_v53 }
 0x2eb   : > { %1248 = vmatprep.subr.bf16.mxu0 %v2464_v54  ;;  %1289 = vmatprep.subr.bf16.mxu1 %v2466_v55 }
 0x2ee   : > { %1249 = vmatpush1.bf16.msra.mxu0 %v2472_v56  ;;  %1290 = vmatpush1.bf16.msra.mxu1 %v2474_v57 }
 0x2ef   : > { %1250 = vmatprep.subr.bf16.mxu0 %v2478_v58  ;;  %1291 = vmatprep.subr.bf16.mxu1 %v2480_v59 }
 0x2f2   : > { %1251 = vmatpush1.bf16.msra.mxu0 %v2484_v60  ;;  %1292 = vmatpush1.bf16.msra.mxu1 %v2486_v61 }
 0x2f3   : > { %1252 = vmatprep.subr.bf16.mxu0 %v2490_v62  ;;  %1293 = vmatprep.subr.bf16.mxu1 %v2492_v63 }
 0x2f6   : > { %1253 = vmatpush1.bf16.msra.mxu0 %v2496_v0  ;;  %1294 = vmatpush1.bf16.msra.mxu1 %v2498_v1 }
 0x2f7   : > { %1254 = vmatprep.subr.bf16.mxu0 %v2502_v2  ;;  %1295 = vmatprep.subr.bf16.mxu1 %v2504_v3 }
 0x2fa   : > { %1255 = vmatpush1.bf16.msra.mxu0 %v2508_v4  ;;  %1296 = vmatpush1.bf16.msra.mxu1 %v2510_v6 }
 0x3b0   : > { %v1162_v39 = vpop.f32.mrb[16].mxu0  ;;  %v1203_v40 = vpop.f32.mrb[16].mxu1 }
 0x3b1   : > { %v1210_v42 = vadd.f32 %v1162_v39, %v2799_v41  ;;  %v1212_v44 = vadd.f32 %v1203_v40, %v2800_v43  ;;  %v1164_v45 = vpop.f32.mrb[17].mxu0  ;;  %v1205_v46 = vpop.f32.mrb[17].mxu1 }
 0x3b2   : > { %v1211_v49 = vadd.f32 %v1164_v45, %v2801_v47  ;;  %v1213_v51 = vadd.f32 %v1205_v46, %v2802_v50  ;;  %v1166_v52 = vpop.f32.mrb[18].mxu0  ;;  %v1207_v53 = vpop.f32.mrb[18].mxu1 }
 0x3b3   : > { %v1607_v54 = vmul.f32 -1.442695, %v1210_v42  ;;  %v1167_v55 = vpop.f32.mrb[19].mxu0  ;;  %v1208_v56 = vpop.f32.mrb[19].mxu1  ;;  %v1609_v58 = vmul.f32 -1.442695, %v1212_v44 }
 0x3b4   : > { %v1608_v57 = vmul.f32 -1.442695, %v1211_v49 }
 0x3b5   : > { %1853 = vpow2.f32 %v1607_v54 }
 0x3b6   : > { %1855 = vpow2.f32 %v1608_v57 }
 0x3b7   : > { %1857 = vtanh.f32 %v1213_v51 }
 0x3b8   : > { %1859 = vpow2.f32 %v1609_v58 }
 0x3bf   : > { %v1854_v59 = vpop.eup %1853 }
 0x3c0   : > { %v1223_v60 = vadd.f32 1.0, %v1854_v59  ;;  %v1856_v61 = vpop.eup %1855 }
 0x3c1   : > { %v1224_v62 = vadd.f32 1.0, %v1856_v61  ;;  %v1858_v63 = vpop.eup %1857 }
 0x3c2   : > { %1861 = vrcp.f32 %v1223_v60  ;;  %v1860_v0 = vpop.eup %1859 }
 0x3c3   : > { %1863 = vrcp.f32 %v1224_v62  ;;  %v1225_v4 = vadd.f32 1.0, %v1860_v0 }
 0x3c5   : > { %1865 = vrcp.f32 %v1225_v4 }
 0x3cc   : > { %v1862_v1 = vpop.eup %1861 }
 0x3cd   : > { %v1234_v2 = vmul.f32 %v1862_v1, %v1858_v63  ;;  %v1864_v3 = vpop.eup %1863 }
 0x3ce   : > { %v1233_v6 = vmul.f32 %v1864_v3, %v2619_v8 }
 0x3cf   : > { %v1866_v26 = vpop.eup %1865 }
 0x3d0   : > { %v1235_v12 = vadd.f32 %v1234_v2, %v1233_v6 }
 0x3d2   : > { %1867 = vtanh.f32 %v1235_v12 }
 0x3dc   : > { %v1868_v28 = vpop.eup %1867 }
 0x3dd   : > { %v1237_v31 = vmul.f32 %v1868_v28, %v1866_v26 }
 0x3df   : > { %v1238_v32 = vpack.c.bf16 %v1237_v31, %v1237_v31 }
 0x3e1   : > { %1239 = vst [vmem:[%s2402_s13 + $0x8] sm:$0xf] %v1238_v32  ;;  %1273 = vmatmul.mubr.bf16.vlgmr.msra.gmra.mrb[20].mxu0 %v1238_v32  ;;  %1314 = vmatmul.mubr.bf16.vlgmr.msra.gmra.mrb[20].mxu1 %v1238_v32 }
 0x4b4   : > { %v1274_v34 = vpop.f32.mrb[20].mxu0  ;;  %v1315_v38 = vpop.f32.mrb[20].mxu1 }
 0x4b5   : > { %v1322_v9 = vadd.f32 %v1274_v34, %v2803_v7  ;;  %v1324_v15 = vadd.f32 %v1315_v38, %v2804_v11  ;;  %v1276_v16 = vpop.f32.mrb[21].mxu0  ;;  %v1317_v17 = vpop.f32.mrb[21].mxu1 }
 0x4b6   : > { %v1323_v19 = vadd.f32 %v1276_v16, %v2805_v18  ;;  %v1325_v36 = vadd.f32 %v1317_v17, %v2574_v23  ;;  %v1278_v37 = vpop.f32.mrb[22].mxu0  ;;  %v1319_v20 = vpop.f32.mrb[22].mxu1 }
 0x4b7   : > { %v1610_v21 = vmul.f32 -1.442695, %v1322_v9  ;;  %v1279_v25 = vpop.f32.mrb[23].mxu0  ;;  %v1320_v27 = vpop.f32.mrb[23].mxu1  ;;  %v1612_v30 = vmul.f32 -1.442695, %v1324_v15 }
 0x4b8   : > { %v1611_v29 = vmul.f32 -1.442695, %v1323_v19 }
 0x4b9   : > { %1869 = vpow2.f32 %v1610_v21 }
 0x4ba   : > { %1871 = vpow2.f32 %v1611_v29 }
 0x4bb   : > { %1873 = vtanh.f32 %v1325_v36 }
 0x4bc   : > { %1875 = vpow2.f32 %v1612_v30 }
 0x4c3   : > { %v1870_v22 = vpop.eup %1869 }
 0x4c4   : > { %v1335_v35 = vadd.f32 1.0, %v1870_v22  ;;  %v1872_v5 = vpop.eup %1871 }
 0x4c5   : > { %v1336_v33 = vadd.f32 1.0, %v1872_v5  ;;  %v1874_v48 = vpop.eup %1873 }
 0x4c6   : > { %1877 = vrcp.f32 %v1335_v35  ;;  %v1876_v23 = vpop.eup %1875 }
 0x4c7   : > { %1879 = vrcp.f32 %v1336_v33  ;;  %v1337_v14 = vadd.f32 1.0, %v1876_v23 }
 0x4c9   : > { %1881 = vrcp.f32 %v1337_v14 }
 0x4d0   : > { %v1878_v8 = vpop.eup %1877 }
 0x4d1   : > { %v1346_v10 = vmul.f32 %v1878_v8, %v1874_v48  ;;  %v1880_v13 = vpop.eup %1879 }
 0x4d2   : > { %v1345_v24 = vmul.f32 %v1880_v13, %v1235_v12 }
 0x4d3   : > { %v1882_v40 = vpop.eup %1881 }
 0x4d4   : > { %v1347_v39 = vadd.f32 %v1346_v10, %v1345_v24 }
 0x4d6   : > { %1883 = vtanh.f32 %v1347_v39  ;;  %1357 = vst [vmem:[#allocation15] sm:$0xff] (!%p1613_p11), %v1347_v39 }
 0x4df   : > { %1355 = sbr.rel (%p1613_p11) target bundleno = 1254 (0x4e6), region = 68 }
 0x4e0   : > { %v1884_v41 = vpop.eup %1883 }
 0x4e1   : > { %v1349_v42 = vmul.f32 %v1884_v41, %v1882_v40 }
 0x4e3   : > { %v1350_v43 = vpack.c.bf16 %v1349_v42, %v1349_v42  ;;  %1356 = vst [vmem:[#allocation13] sm:$0xff] (!%p1613_p11), %v1349_v42 }
 0x4e5   : > { %1351 = vst [vmem:[%s2402_s13 + $0xc] sm:$0xf] %v1350_v43 }
 0x4e6 PF: > { %1358 = vst [vmem:[#allocation2] sm:$0xf] %v1350_v43  ;;  %1359 = vst [vmem:[#allocation3] sm:$0xff] %v1347_v39  ;;  %s2140_s18 = smov [#allocation13]   ;;  %s1624_s14 = sshll.u32 %s2211_s9, 8 }
 0x4e7   : > { %s1388_s25 = sshll.u32 %s2140_s18, 4  ;;  %s2671_s16 = scalar_lea.hbm %s2764_s6, %s1624_s14  ;;  %s1389_s25 = int_to_ptr.vmem [resolvable:$true] %s1388_s25 }
 0x4e8   : > { %s1999_s20 = scalar_lea.vmem %s1389_s25, 128  ;;  %p2806_p13 = scmp.eq.s32.totalorder %s2211_s9, 1 }
 0x4e9   : > { %p2000_p7 = scmp.ne.s32.totalorder %s1389_s25, %s1999_s20  ;;  %p2006_p4 = scmp.lt.s32.totalorder %s1389_s25, %s1389_s25 }
 0x4ea   : > { %p2007_p10 = scmp.lt.s32.totalorder %s1999_s20, %s1999_s20 }
 0x4eb   : > { %p2001_p2 = pnand %p2000_p7, %p2806_p13 }
 0x4ec   : > { %p2008_p3 = por %p2007_p10, %p2006_p4 }
 0x4ed   : > { %p2002_p1 = pneg %p2001_p2 }
 0x4ef   : > { %p2009_p12 = pnand %p2008_p3, %p2002_p1 }
 0x4f1   : > { %2012 = shalt.err (!%p2009_p12)
}
 0x4f2   : > { %s2013_s10 = scalar_lea.hbm %s2765_s7, 128  ;;  %p2807_p0 = pmov %p2806_p13 }
 0x4f3   : > { %p2014_p9 = scmp.ne.s32.totalorder %s2765_s7, %s2013_s10  ;;  %p2019_p11 = scmp.lt.u32.totalorder %s2013_s10, %s2765_s7 }
 0x4f5   : > { %p2015_p6 = pnand %p2014_p9, %p2807_p0 }
 0x4f7   : > { %p2016_p8 = pneg %p2015_p6 }
 0x4f9   : > { %p2021_p7 = pnand %p2019_p11, %p2016_p8 }
 0x4fb   : > { %2024 = shalt.err (!%p2021_p7)
}
 0x4fc   : > { %p2808_p13 = pmov %p2807_p0  ;;  %s1374_s19 = sshll.u32 %s2402_s13, 4  ;;  %s2692_s19 = int_to_ptr.vmem [resolvable:$true] %s1374_s19 }
 0x4fd   : > { %s1361_s20 = scalar_lea.sflag [#allocation6], %s2384_s23  ;;  %s2025_s24 = scalar_lea.vmem %s2692_s19, 256 }
 0x4fe   : > { %1641 = dma.vmem_to_hbm [thread:$0]  (%p2808_p13), %s1389_s25, 128, %s2765_s7, [#allocation14]  }
 0x4ff   : > { %p2026_p2 = scmp.ne.s32.totalorder %s2692_s19, %s2025_s24  ;;  %s2141_s22 = smov [#allocation12]  }
 0x500   : > { %s2029_s10 = sshll.u32 %s2141_s22, 4  ;;  %s2030_s10 = int_to_ptr.vmem [resolvable:$false] %s2029_s10 }
 0x501   : > { %p2027_p1 = pnand %p2026_p2, %p2336_p5  ;;  %s2031_s11 = scalar_lea.vmem %s2030_s10, 512 }
 0x502   : > { %p2032_p10 = scmp.lt.s32.totalorder %s2692_s19, %s2030_s10  ;;  %p2033_p3 = scmp.lt.s32.totalorder %s2031_s11, %s2025_s24 }
 0x503   : > { %p2028_p4 = pneg %p2027_p1 }
 0x504   : > { %p2034_p12 = por %p2033_p3, %p2032_p10 }
 0x506   : > { %p2035_p9 = pnand %p2034_p12, %p2028_p4 }
 0x508   : > { %2038 = shalt.err (!%p2035_p9)
}
 0x509   : > { %s2039_s13 = scalar_lea.hbm %s2671_s16, 256  ;;  %s2043_s15 = scalar_lea.hbm %s2764_s6, 512 }
 0x50a   : > { %p2040_p0 = scmp.ne.s32.totalorder %s2671_s16, %s2039_s13  ;;  %p2044_p11 = scmp.lt.u32.totalorder %s2671_s16, %s2764_s6 }
 0x50b   : > { %p2045_p7 = scmp.lt.u32.totalorder %s2043_s15, %s2039_s13  ;;  %p2047_p2 = scmp.lt.u32.totalorder %s2039_s13, %s2671_s16 }
 0x50c   : > { %p2041_p6 = pnand %p2040_p0, %p2336_p5 }
 0x50d   : > { %p2046_p13 = por %p2045_p7, %p2044_p11 }
 0x50e   : > { %p2042_p8 = pneg %p2041_p6 }
 0x50f   : > { %p2048_p1 = por %p2047_p2, %p2046_p13 }
 0x511   : > { %p2049_p4 = pnand %p2048_p1, %p2042_p8 }
 0x513   : > { %2052 = shalt.err (!%p2049_p4)
}
 0x514   : > { %s2142_s21 = smov 64   ;;  %s2143_s24 = smov 4  }
 0x515   : > { %1639 = dma.vmem_to_hbm [thread:$0]  (%p2336_p5), %s2692_s19, 256, %s2671_s16, %s1361_s20, %s2142_s21, %s2142_s21, %s2143_s24  }
 0x516   : > { %s2144_s22 = smov [#allocation15]   ;;  %p2809_p3 = scmp.eq.s32.totalorder %s2211_s9, 1 }
 0x517   : > { %s1399_s10 = sshll.u32 %s2144_s22, 4  ;;  %s1400_s10 = int_to_ptr.vmem [resolvable:$true] %s1399_s10 }
 0x518   : > { %s2053_s11 = scalar_lea.vmem %s1400_s10, 128  ;;  %p2060_p0 = scmp.lt.s32.totalorder %s1400_s10, %s1400_s10 }
 0x519   : > { %p2054_p10 = scmp.ne.s32.totalorder %s1400_s10, %s2053_s11  ;;  %p2061_p6 = scmp.lt.s32.totalorder %s2053_s11, %s2053_s11 }
 0x51b   : > { %p2055_p12 = pnand %p2054_p10, %p2809_p3  ;;  %p2062_p8 = por %p2061_p6, %p2060_p0 }
 0x51d   : > { %p2056_p9 = pneg %p2055_p12 }
 0x51f   : > { %p2063_p11 = pnand %p2062_p8, %p2056_p9 }
 0x521   : > { %2066 = shalt.err (!%p2063_p11)
}
 0x522   : > { %s2067_s12 = scalar_lea.hbm %s2766_s8, 128  ;;  %p2810_p7 = pmov %p2809_p3 }
 0x523   : > { %p2068_p5 = scmp.ne.s32.totalorder %s2766_s8, %s2067_s12  ;;  %p2073_p1 = scmp.lt.u32.totalorder %s2067_s12, %s2766_s8 }
 0x525   : > { %p2069_p13 = pnand %p2068_p5, %p2810_p7 }
 0x527   : > { %p2070_p2 = pneg %p2069_p13 }
 0x529   : > { %p2075_p4 = pnand %p2073_p1, %p2070_p2 }
 0x52b   : > { %2078 = shalt.err (!%p2075_p4)
}
 0x52c   : > { %p2811_p10 = pmov %p2809_p3 }
 0x52e   : > { %1643 = dma.vmem_to_hbm [thread:$0]  (%p2811_p10), %s1400_s10, 128, %s2766_s8, [#allocation14]  }
 0x52f   : > { %2108 = dma.done.wait (%p2809_p3), [#allocation14], 256   ;;  %p2812_p12 = pmov %p2809_p3 }
 0x531   : > { %2110 = vsyncadd (%p2812_p12), [#allocation14], 4294967040 }
 0x532 PF: > { %s2813_s18 = sld [smem:[#allocation21_spill]]  ;;  %s2814_s14 = sld [smem:[#allocation22_spill]] }
 0x533   : > { %p2816_p0 = scmp.ge.s32.totalorder %s2129_s30, 2 }
 0x538   : > { %s1419_s21 = sand.u32 1, %s2813_s18   ;;  %p2815_p9 = scmp.ne.s32.totalorder %s2814_s14, 0 }
 0x539   : > { %s1420_s24 = scalar_lea.sflag [#allocation6], %s1419_s21 }
 0x53a   : > { %p1664_p6 = pnand %p2816_p0, %p2815_p9 }
 0x53c   : > { %2112 = dma.done.wait (!%p1664_p6), %s1420_s24, 256  }
 0x53d   : > { %2114 = vsyncadd (!%p1664_p6), %s1420_s24, 4294967040  ;;  %s2817_s22 = smov %s2332_s27  ;;  %p25_p8 = scmp.ge.s32.totalorder %s2322_s26, 4  }
 0x53e   : > { %s2818_s27 = smov %s2121_s28  ;;  %s2819_s28 = smov %s2125_s29 }
 0x53f   : > { %s2820_s29 = smov %s2817_s22  ;;  %s2821_s30 = smov %s2322_s26 }
 0x540   :  { %27 = sbr.rel (!%p25_p8) target bundleno = 8 (0x8), region = 125 }
 0x547   :  { %1425 = vsyncpa [#allocation5], 1 }
 0x548   :  { %1427 = vsyncpa [#allocation5 + $0x1], 1 }
 0x549   :  { %1428 = vsyncpa [#allocation8], 1 }
 0x54a   :  { %1429 = vsyncpa [#allocation11], 1 }
 0x54b   :  { %1430 = vsyncpa [#allocation6], 1 }
 0x54c   :  { %1432 = vsyncpa [#allocation6 + $0x1], 1 }
 0x54d   :  { %1433 = vsyncpa [#allocation14], 1 }

</bundles_post_ra>
